<compile_context>
chip_gen: v7x
topology: tpu7x:2x2x1
jax: 0.10.0
libtpu: 0.0.40
codegen_flags: <defaults>
</compile_context>

<pallas_src>
import math
import functools

import jax
import jax.numpy as jnp
from jax.experimental import pallas as pl
from jax.experimental.pallas import tpu as pltpu

LANE = 128   # TPU lane width: stage outputs padded to this feature width (lane-dense stores)
SUB = 8      # sublane multiple used for row padding


def _round_up(n, m):
    return ((n + m - 1) // m) * m


# ---------------------------------------------------------------------------
# Fused MetaLayer kernel
# ---------------------------------------------------------------------------

def _metalayer_kernel(
    # graph data (bf16, row-padded)
    x_ref, ea_ref, xc_ref, u_ref,
    # gather (L,1) / scatter (1,L) index vectors (int32, pad entries = -1)
    row_g, col_g, erowbat_g, col_s, nbat_g,
    trow_g, tcol_s, arow_g, acol_s, tb_g,
    ebat_s, nbat_s, cbat_s,
    # per-graph element counts for scatter_mean (f32, clamped >= 1, pad rows = 1)
    cnt_e, cnt_n, cnt_c,
    # merged shared-LHS first-layer weights (bf16)
    wx, wu, wxc,
    # edge mlp
    e_w1c, e_b1, e_w2, e_b2,
    # node mlp1 / mlp2
    n1_w1b, n1_b1, n1_w2, n1_b2,
    n2_w1b, n2_b1, n2_w2, n2_b2,
    # subgraph mlp1 / mlp2 / sub_mlp
    s1_b1, s1_w2, s1_b2,
    s2_w1, s2_b1, s2_w2, s2_b2,
    s_w1a, s_w1c, s_b1, s_w2, s_b2,
    # global mlp
    g_w1b, g_w1c, g_w1d, g_b1, g_w2, g_b2,
    # outputs (f32, LANE-wide, pad rows zeroed)
    e_out_ref, x_out_ref, xc_out_ref, u_out_ref,
    *, H, e_valid, n_valid, c_valid, b_valid):
    f32 = jnp.float32
    bf16 = jnp.bfloat16
    Np = x_ref.shape[0]
    Cp = xc_ref.shape[0]
    Bp = u_ref.shape[0]
    Ep = ea_ref.shape[0]

    def gmat(idx_ref, num_src):
        # (L,1) int32 (pad=-1) -> (L, num_src) bf16 one-hot; (G @ X)[l] == X[idx[l]], pad rows zero.
        L = idx_ref.shape[0]
        src = jax.lax.broadcasted_iota(jnp.int32, (L, num_src), 1)
        return (src == idx_ref[...]).astype(bf16)

    def smat(idx_ref, num_seg):
        # (1,L) int32 (pad=-1) -> (num_seg, L) bf16; S @ X == scatter_sum(X, idx), pad cols excluded.
        L = idx_ref.shape[1]
        seg = jax.lax.broadcasted_iota(jnp.int32, (num_seg, L), 0)
        return (seg == idx_ref[...]).astype(bf16)

    def rowmask(rows, valid):
        return (jax.lax.broadcasted_iota(jnp.int32, (rows, 1), 0) < valid).astype(f32)

    def dot(a, b):
        return jnp.dot(a, b, preferred_element_type=f32)

    # ---- shared projections: W1 folded through gathers, shared-LHS pieces column-stacked ----
    x_proj = dot(x_ref[...], wx[...])            # (Np, 4H): [edge_a | edge_b | node1_a | node2_a]
    u_proj = dot(u_ref[...], wu[...])            # (Bp, 4H): [edge_d | node2_c | sub_d  | glob_a ]
    xc_proj = dot(xc_ref[...], wxc[...])         # (Cp, 2H): [sub1_w1 | sub_b]
    x_proj_b = x_proj.astype(bf16)
    u_proj_b = u_proj.astype(bf16)

    xg_row = dot(gmat(row_g, Np), x_proj_b)      # (Ep, 4H)  x[row] through all x-projections
    xg_col = dot(gmat(col_g, Np), x_proj_b)      # (Ep, 4H)  x[col]
    ug_edge = dot(gmat(erowbat_g, Bp), u_proj_b)  # (Ep, 4H)  u[batch[row]]

    # ================= EdgeModel_ml2 =================
    z_e = (xg_row[:, 0:H] + xg_col[:, H:2 * H]
           + dot(ea_ref[...], e_w1c[...])
           + ug_edge[:, 0:H] + e_b1[...])
    h_e = jnp.maximum(z_e, 0.0)
    e_full = dot(h_e.astype(bf16), e_w2[...]) + e_b2[...]          # (Ep, LANE)
    e_full = e_full * rowmask(Ep, e_valid)
    e_out_ref[...] = e_full.astype(e_out_ref.dtype)
    e_b = e_full.astype(bf16)

    # ================= NodeModel_ml2 =================
    # mlp1 on scatter_sum(cat([x[row], e_new]), col): fold W1 before the (linear) scatter
    z1_edge = xg_row[:, 2 * H:3 * H] + dot(e_b, n1_w1b[...])       # (Ep, H)
    agg_n = dot(smat(col_s, Np), z1_edge.astype(bf16))             # (Np, H)
    h_n1 = jnp.maximum(agg_n + n1_b1[...], 0.0)
    m1 = dot(h_n1.astype(bf16), n1_w2[...]) + n1_b2[...]           # (Np, H)

    ug_node = dot(gmat(nbat_g, Bp), u_proj_b)                      # (Np, 4H)  u[batch]
    z2 = (x_proj[:, 3 * H:4 * H] + dot(m1.astype(bf16), n2_w1b[...])
          + ug_node[:, H:2 * H] + n2_b1[...])
    h_n2 = jnp.maximum(z2, 0.0)
    x_full = dot(h_n2.astype(bf16), n2_w2[...]) + n2_b2[...]       # (Np, LANE)
    x_full = x_full * rowmask(Np, n_valid)
    x_out_ref[...] = x_full.astype(x_out_ref.dtype)
    x_b = x_full.astype(bf16)

    # ================= SubgraphModel_ml2 =================
    # out = mlp1(scatter_sum(x_clique[trow], tcol)); W1 folded through gather + scatter
    xc_tr = dot(gmat(trow_g, Cp), xc_proj.astype(bf16))            # (TEp, 2H)
    agg1 = dot(smat(tcol_s, Cp), xc_tr[:, 0:H].astype(bf16))       # (Cp, H)
    h_s1 = jnp.maximum(agg1 + s1_b1[...], 0.0)
    out1 = dot(h_s1.astype(bf16), s1_w2[...]) + s1_b2[...]         # (Cp, H)

    # node_info = mlp2(scatter_sum(x_new[arow], acol)); W1 folded through gather + scatter
    xn_proj = dot(x_b, s2_w1[...])                                 # (Np, H)
    xn_ar = dot(gmat(arow_g, Np), xn_proj.astype(bf16))            # (Ap, H)
    agg2 = dot(smat(acol_s, Cp), xn_ar.astype(bf16))               # (Cp, H)
    h_s2 = jnp.maximum(agg2 + s2_b1[...], 0.0)
    ninfo = dot(h_s2.astype(bf16), s2_w2[...]) + s2_b2[...]        # (Cp, H)

    ug_tb = dot(gmat(tb_g, Bp), u_proj_b)                          # (Cp, 4H)  u[tree_batch]
    z_s = (dot(ninfo.astype(bf16), s_w1a[...]) + xc_proj[:, H:2 * H]
           + dot(out1.astype(bf16), s_w1c[...]) + ug_tb[:, 2 * H:3 * H] + s_b1[...])
    h_s = jnp.maximum(z_s, 0.0)
    xc_full = dot(h_s.astype(bf16), s_w2[...]) + s_b2[...]         # (Cp, LANE)
    xc_full = xc_full * rowmask(Cp, c_valid)
    xc_out_ref[...] = xc_full.astype(xc_out_ref.dtype)
    xc_b = xc_full.astype(bf16)

    # ================= GlobalModel_ml2 =================
    inv_e = pl.reciprocal(cnt_e[...], approx=True)                 # (Bp, 1) — EUP, off the VPU
    inv_n = pl.reciprocal(cnt_n[...], approx=True)
    inv_c = pl.reciprocal(cnt_c[...], approx=True)
    edge_info = dot(smat(ebat_s, Bp), e_b) * inv_e                 # scatter_mean(e_new, batch[row])
    node_info = dot(smat(nbat_s, Bp), x_b) * inv_n                 # scatter_mean(x_new, batch)
    sub_info = dot(smat(cbat_s, Bp), xc_b) * inv_c                 # scatter_mean(xc_new, tree_batch)
    z_g = (u_proj[:, 3 * H:4 * H]
           + dot(node_info.astype(bf16), g_w1b[...])
           + dot(edge_info.astype(bf16), g_w1c[...])
           + dot(sub_info.astype(bf16), g_w1d[...]) + g_b1[...])
    h_g = jnp.maximum(z_g, 0.0)
    u_full = dot(h_g.astype(bf16), g_w2[...]) + g_b2[...]          # (Bp, LANE)
    u_full = u_full * rowmask(Bp, b_valid)
    u_out_ref[...] = u_full.astype(u_out_ref.dtype)


# ---------------------------------------------------------------------------
# Parameter construction (PyTorch-Linear-style uniform init, merged/padded for the kernel)
# ---------------------------------------------------------------------------

def linear_params(key, in_dim, out_dim):
    k1, k2 = jax.random.split(key)
    bound = 1.0 / math.sqrt(in_dim)
    w = jax.random.uniform(k1, (in_dim, out_dim), minval=-bound, maxval=bound, dtype=jnp.float32)
    b = jax.random.uniform(k2, (1, out_dim), minval=-bound, maxval=bound, dtype=jnp.float32)
    return w, b


def _mlp_raw(key, din, hidden, dout):
    k1, k2 = jax.random.split(key)
    w1, b1 = linear_params(k1, din, hidden)
    w2, b2 = linear_params(k2, hidden, dout)
    return w1, b1, w2, b2


def _pad_rows(a, rows):
    return jnp.pad(a, ((0, rows - a.shape[0]), (0, 0)))


def _pad_cols(a, cols):
    return jnp.pad(a, ((0, 0), (0, cols - a.shape[1])))


def make_metalayer_params(key, dn, de, ds, dg, dn_out, de_out, ds_out, dg_out, hidden):
    # The module's concat shapes implicitly require ds == hidden and dn_out == hidden.
    assert ds == hidden and dn_out == hidden
    assert max(de_out, dn_out, ds_out, dg_out, hidden) <= LANE
    H = hidden
    bf16 = jnp.bfloat16
    ks = jax.random.split(key, 7)

    # raw per-MLP params (PyTorch Linear init), f32
    e_w1, e_b1, e_w2, e_b2 = _mlp_raw(ks[0], 2 * dn + de + dg, H, de_out)
    n1_w1, n1_b1, n1_w2, n1_b2 = _mlp_raw(ks[1], dn + de_out, H, H)
    n2_w1, n2_b1, n2_w2, n2_b2 = _mlp_raw(ks[2], dn + H + dg, H, dn_out)
    s1_w1, s1_b1, s1_w2, s1_b2 = _mlp_raw(ks[3], H, H, H)
    s2_w1, s2_b1, s2_w2, s2_b2 = _mlp_raw(ks[4], H, H, H)
    s_w1, s_b1, s_w2, s_b2 = _mlp_raw(ks[5], H + ds + H + dg, H, ds_out)
    g_w1, g_b1, g_w2, g_b2 = _mlp_raw(ks[6], dg + dn_out + de_out + ds_out, H, dg_out)

    # merged shared-LHS W1 stacks (column-stacked so one matmul serves several stages)
    wx = jnp.concatenate([e_w1[:dn], e_w1[dn:2 * dn], n1_w1[:dn], n2_w1[:dn]], axis=1)      # (dn, 4H)
    wu = jnp.concatenate([e_w1[2 * dn + de:], n2_w1[dn + H:], s_w1[H + ds + H:], g_w1[:dg]],
                         axis=1)                                                            # (dg, 4H)
    wxc = jnp.concatenate([s1_w1, s_w1[H:H + ds]], axis=1)                                  # (ds, 2H)

    return dict(
        wx=wx.astype(bf16), wu=wu.astype(bf16), wxc=wxc.astype(bf16),
        # edge mlp
        e_w1c=e_w1[2 * dn:2 * dn + de].astype(bf16), e_b1=e_b1,
        e_w2=_pad_cols(e_w2, LANE).astype(bf16), e_b2=_pad_cols(e_b2, LANE),
        # node mlp1 / mlp2
        n1_w1b=_pad_rows(n1_w1[dn:], LANE).astype(bf16), n1_b1=n1_b1,
        n1_w2=n1_w2.astype(bf16), n1_b2=n1_b2,
        n2_w1b=n2_w1[dn:dn + H].astype(bf16), n2_b1=n2_b1,
        n2_w2=_pad_cols(n2_w2, LANE).astype(bf16), n2_b2=_pad_cols(n2_b2, LANE),
        # subgraph mlp1 / mlp2 / sub_mlp
        s1_b1=s1_b1, s1_w2=s1_w2.astype(bf16), s1_b2=s1_b2,
        s2_w1=_pad_rows(s2_w1, LANE).astype(bf16), s2_b1=s2_b1,
        s2_w2=s2_w2.astype(bf16), s2_b2=s2_b2,
        s_w1a=s_w1[:H].astype(bf16), s_w1c=s_w1[H + ds:H + ds + H].astype(bf16),
        s_b1=s_b1, s_w2=_pad_cols(s_w2, LANE).astype(bf16), s_b2=_pad_cols(s_b2, LANE),
        # global mlp
        g_w1b=_pad_rows(g_w1[dg:dg + dn_out], LANE).astype(bf16),
        g_w1c=_pad_rows(g_w1[dg + dn_out:dg + dn_out + de_out], LANE).astype(bf16),
        g_w1d=_pad_rows(g_w1[dg + dn_out + de_out:], LANE).astype(bf16),
        g_b1=g_b1, g_w2=_pad_cols(g_w2, LANE).astype(bf16), g_b2=_pad_cols(g_b2, LANE),
    )


# ---------------------------------------------------------------------------
# MetaLayer_ml2 forward: one fused pallas_call
# ---------------------------------------------------------------------------

def metalayer_forward(params, x, edge_index, edge_attr, u,
                      tree_edge_index, atom2clique_index, x_clique,
                      ori_batch, tree_batch, *, dims):
    dn_out, de_out = dims["dn_out"], dims["de_out"]
    ds_out, dg_out = dims["ds_out"], dims["dg_out"]
    hidden = dims["hidden"]
    f32, bf16 = jnp.float32, jnp.bfloat16

    N = x.shape[0]; E = edge_attr.shape[0]; C = x_clique.shape[0]; B = u.shape[0]
    A = atom2clique_index.shape[1]; TE = tree_edge_index.shape[1]
    N_p, E_p, C_p, B_p = (_round_up(v, SUB) for v in (N, E, C, B))
    A_p, TE_p = _round_up(A, SUB), _round_up(TE, SUB)

    x_b = _pad_rows(x.astype(f32), N_p).astype(bf16)
    ea_b = _pad_rows(edge_attr.astype(f32), E_p).astype(bf16)
    xc_b = _pad_rows(x_clique.astype(f32), C_p).astype(bf16)
    u_b = _pad_rows(u.astype(f32), B_p).astype(bf16)

    row, col = edge_index[0], edge_index[1]
    trow, tcol = tree_edge_index[0], tree_edge_index[1]
    arow, acol = atom2clique_index[0], atom2clique_index[1]
    batch_row = ori_batch[row]                      # tiny int gather (JAX glue)

    def g_idx(idx, L):   # gather-index column vector, pad = -1
        idx = jnp.pad(idx.astype(jnp.int32), (0, L - idx.shape[0]), constant_values=-1)
        return idx.reshape(L, 1)

    def s_idx(idx, L):   # scatter-index row vector, pad = -1
        idx = jnp.pad(idx.astype(jnp.int32), (0, L - idx.shape[0]), constant_values=-1)
        return idx.reshape(1, L)

    def seg_count(idx):  # per-graph element count, clamp(min=1), pad rows = 1
        cnt = jnp.maximum(jnp.zeros((B,), f32).at[idx].add(1.0), 1.0).reshape(B, 1)
        return jnp.pad(cnt, ((0, B_p - B), (0, 0)), constant_values=1.0)

    p = params
    args = (
        x_b, ea_b, xc_b, u_b,
        g_idx(row, E_p), g_idx(col, E_p), g_idx(batch_row, E_p),
        s_idx(col, E_p), g_idx(ori_batch, N_p),
        g_idx(trow, TE_p), s_idx(tcol, TE_p),
        g_idx(arow, A_p), s_idx(acol, A_p), g_idx(tree_batch, C_p),
        s_idx(batch_row, E_p), s_idx(ori_batch, N_p), s_idx(tree_batch, C_p),
        seg_count(batch_row), seg_count(ori_batch), seg_count(tree_batch),
        p["wx"], p["wu"], p["wxc"],
        p["e_w1c"], p["e_b1"], p["e_w2"], p["e_b2"],
        p["n1_w1b"], p["n1_b1"], p["n1_w2"], p["n1_b2"],
        p["n2_w1b"], p["n2_b1"], p["n2_w2"], p["n2_b2"],
        p["s1_b1"], p["s1_w2"], p["s1_b2"],
        p["s2_w1"], p["s2_b1"], p["s2_w2"], p["s2_b2"],
        p["s_w1a"], p["s_w1c"], p["s_b1"], p["s_w2"], p["s_b2"],
        p["g_w1b"], p["g_w1c"], p["g_w1d"], p["g_b1"], p["g_w2"], p["g_b2"],
    )

    # advisory cost estimate (dominated by the one-hot gather/scatter matmuls)
    H, H4 = hidden, 4 * hidden
    flops = 2 * (
        N_p * x.shape[1] * H4 + B_p * u.shape[1] * H4 + C_p * x_clique.shape[1] * 2 * H
        + 2 * E_p * N_p * H4 + E_p * B_p * H4
        + E_p * edge_attr.shape[1] * H + E_p * H * LANE
        + E_p * LANE * H + N_p * E_p * H + N_p * H * H
        + N_p * B_p * H4 + N_p * H * H + N_p * H * LANE
        + TE_p * C_p * 2 * H + C_p * TE_p * H + C_p * H * H
        + N_p * LANE * H + A_p * N_p * H + C_p * A_p * H + C_p * H * H
        + C_p * B_p * H4 + 2 * C_p * H * H + C_p * H * LANE
        + B_p * (E_p + N_p + C_p) * LANE + 3 * B_p * LANE * H + B_p * H * LANE)
    nbytes = sum(int(math.prod(a.shape)) * a.dtype.itemsize for a in args)
    nbytes += (E_p + N_p + C_p + B_p) * LANE * 4

    kernel = functools.partial(_metalayer_kernel, H=hidden,
                               e_valid=E, n_valid=N, c_valid=C, b_valid=B)
    e_out, x_out, xc_out, u_out = pl.pallas_call(
        kernel,
        out_shape=(jax.ShapeDtypeStruct((E_p, LANE), f32),
                   jax.ShapeDtypeStruct((N_p, LANE), f32),
                   jax.ShapeDtypeStruct((C_p, LANE), f32),
                   jax.ShapeDtypeStruct((B_p, LANE), f32)),
        compiler_params=pltpu.CompilerParams(vmem_limit_bytes=48 * 1024 * 1024),
        cost_estimate=pl.CostEstimate(flops=int(flops), transcendentals=0,
                                      bytes_accessed=int(nbytes)),
    )(*args)

    return (x_out[:N, :dn_out], e_out[:E, :de_out],
            xc_out[:C, :ds_out], u_out[:B, :dg_out])


# ---------------------------------------------------------------------------
# Demo
# ---------------------------------------------------------------------------

if __name__ == "__main__":
    key = jax.random.PRNGKey(0)

    # dims (ds == hidden and dn_out == hidden required by the module's concat shapes)
    hidden = 32
    dn, de, ds, dg = 8, 8, hidden, 8
    dn_out, de_out, ds_out, dg_out = hidden, 8, 8, 8

    # graph sizes
    N, E, C, B, A, TE = 16, 24, 6, 2, 16, 10

    k_par, k_x, k_e, k_u, k_xc, k_ei, k_tei, k_a2c = jax.random.split(key, 8)

    params = make_metalayer_params(k_par, dn, de, ds, dg,
                                   dn_out, de_out, ds_out, dg_out, hidden)

    x = jax.random.normal(k_x, (N, dn), dtype=jnp.float32)
    edge_attr = jax.random.normal(k_e, (E, de), dtype=jnp.float32)
    u = jax.random.normal(k_u, (B, dg), dtype=jnp.float32)
    x_clique = jax.random.normal(k_xc, (C, ds), dtype=jnp.float32)

    edge_index = jax.random.randint(k_ei, (2, E), 0, N, dtype=jnp.int32)
    tree_edge_index = jax.random.randint(k_tei, (2, TE), 0, C, dtype=jnp.int32)
    atom2clique_index = jnp.stack([
        jnp.arange(A, dtype=jnp.int32),
        jax.random.randint(k_a2c, (A,), 0, C, dtype=jnp.int32),
    ], axis=0)
    ori_batch = jnp.concatenate([jnp.zeros(N // 2, jnp.int32),
                                 jnp.ones(N - N // 2, jnp.int32)])
    tree_batch = jnp.array([0, 0, 0, 1, 1, 1], dtype=jnp.int32)

    dims = dict(dn_out=dn_out, de_out=de_out, ds_out=ds_out, dg_out=dg_out, hidden=hidden)
    fwd = jax.jit(functools.partial(metalayer_forward, dims=dims))

    x_new, e_new, xc_new, u_new = fwd(params, x, edge_index, edge_attr, u,
                                      tree_edge_index, atom2clique_index,
                                      x_clique, ori_batch, tree_batch)
    jax.block_until_ready((x_new, e_new, xc_new, u_new))

    assert x_new.shape == (N, dn_out)
    assert e_new.shape == (E, de_out)
    assert xc_new.shape == (C, ds_out)
    assert u_new.shape == (B, dg_out)
    assert bool(jnp.all(jnp.isfinite(x_new))) and bool(jnp.all(jnp.isfinite(e_new)))
    assert bool(jnp.all(jnp.isfinite(xc_new))) and bool(jnp.all(jnp.isfinite(u_new)))
    print("KERNEL_OK")
</pallas_src>

<mosaic_0001>
module attributes {stable_mosaic.version = 11 : i64} {
  func.func private @main(%arg0: i32) attributes {dimension_semantics = [#tpu.dimension_semantics<core_parallel>], iteration_bounds = array<i64: 2>, tpu.core_type = #tpu.core_type<sc_scalar_subcore>, window_params = []} {
    return
  }
}

module attributes {stable_mosaic.version = 11 : i64} {
  func.func private @main(%arg0: i32) attributes {dimension_semantics = [#tpu.dimension_semantics<core_parallel>], iteration_bounds = array<i64: 2>, tpu.core_type = #tpu.core_type<sc_scalar_subcore>, window_params = []} {
    return
  }
}

module attributes {stable_mosaic.version = 11 : i64} {
  func.func @_metalayer_kernel(%arg0: memref<16x8xbf16, #tpu.memory_space<vmem>>, %arg1: memref<24x8xbf16, #tpu.memory_space<vmem>>, %arg2: memref<8x32xbf16, #tpu.memory_space<vmem>>, %arg3: memref<8x8xbf16, #tpu.memory_space<vmem>>, %arg4: memref<24x1xi32, #tpu.memory_space<vmem>>, %arg5: memref<24x1xi32, #tpu.memory_space<vmem>>, %arg6: memref<24x1xi32, #tpu.memory_space<vmem>>, %arg7: memref<1x24xi32, #tpu.memory_space<vmem>>, %arg8: memref<16x1xi32, #tpu.memory_space<vmem>>, %arg9: memref<16x1xi32, #tpu.memory_space<vmem>>, %arg10: memref<1x16xi32, #tpu.memory_space<vmem>>, %arg11: memref<16x1xi32, #tpu.memory_space<vmem>>, %arg12: memref<1x16xi32, #tpu.memory_space<vmem>>, %arg13: memref<8x1xi32, #tpu.memory_space<vmem>>, %arg14: memref<1x24xi32, #tpu.memory_space<vmem>>, %arg15: memref<1x16xi32, #tpu.memory_space<vmem>>, %arg16: memref<1x8xi32, #tpu.memory_space<vmem>>, %arg17: memref<8x1xf32, #tpu.memory_space<vmem>>, %arg18: memref<8x1xf32, #tpu.memory_space<vmem>>, %arg19: memref<8x1xf32, #tpu.memory_space<vmem>>, %arg20: memref<8x128xbf16, #tpu.memory_space<vmem>>, %arg21: memref<8x128xbf16, #tpu.memory_space<vmem>>, %arg22: memref<32x64xbf16, #tpu.memory_space<vmem>>, %arg23: memref<8x32xbf16, #tpu.memory_space<vmem>>, %arg24: memref<1x32xf32, #tpu.memory_space<vmem>>, %arg25: memref<32x128xbf16, #tpu.memory_space<vmem>>, %arg26: memref<1x128xf32, #tpu.memory_space<vmem>>, %arg27: memref<128x32xbf16, #tpu.memory_space<vmem>>, %arg28: memref<1x32xf32, #tpu.memory_space<vmem>>, %arg29: memref<32x32xbf16, #tpu.memory_space<vmem>>, %arg30: memref<1x32xf32, #tpu.memory_space<vmem>>, %arg31: memref<32x32xbf16, #tpu.memory_space<vmem>>, %arg32: memref<1x32xf32, #tpu.memory_space<vmem>>, %arg33: memref<32x128xbf16, #tpu.memory_space<vmem>>, %arg34: memref<1x128xf32, #tpu.memory_space<vmem>>, %arg35: memref<1x32xf32, #tpu.memory_space<vmem>>, %arg36: memref<32x32xbf16, #tpu.memory_space<vmem>>, %arg37: memref<1x32xf32, #tpu.memory_space<vmem>>, %arg38: memref<128x32xbf16, #tpu.memory_space<vmem>>, %arg39: memref<1x32xf32, #tpu.memory_space<vmem>>, %arg40: memref<32x32xbf16, #tpu.memory_space<vmem>>, %arg41: memref<1x32xf32, #tpu.memory_space<vmem>>, %arg42: memref<32x32xbf16, #tpu.memory_space<vmem>>, %arg43: memref<32x32xbf16, #tpu.memory_space<vmem>>, %arg44: memref<1x32xf32, #tpu.memory_space<vmem>>, %arg45: memref<32x128xbf16, #tpu.memory_space<vmem>>, %arg46: memref<1x128xf32, #tpu.memory_space<vmem>>, %arg47: memref<128x32xbf16, #tpu.memory_space<vmem>>, %arg48: memref<128x32xbf16, #tpu.memory_space<vmem>>, %arg49: memref<128x32xbf16, #tpu.memory_space<vmem>>, %arg50: memref<1x32xf32, #tpu.memory_space<vmem>>, %arg51: memref<32x128xbf16, #tpu.memory_space<vmem>>, %arg52: memref<1x128xf32, #tpu.memory_space<vmem>>, %arg53: memref<24x128xf32, #tpu.memory_space<vmem>>, %arg54: memref<16x128xf32, #tpu.memory_space<vmem>>, %arg55: memref<8x128xf32, #tpu.memory_space<vmem>>, %arg56: memref<8x128xf32, #tpu.memory_space<vmem>>) attributes {dimension_semantics = [], scalar_prefetch = 0 : i64, scratch_operands = 0 : i64, tpu.core_type = #tpu.core_type<tc>} {
    %c0 = arith.constant 0 : index
    %c0_0 = arith.constant 0 : index
    %0 = vector.load %arg0[%c0, %c0_0] : memref<16x8xbf16, #tpu.memory_space<vmem>>, vector<16x8xbf16>
    %c0_1 = arith.constant 0 : index
    %c0_2 = arith.constant 0 : index
    %1 = vector.load %arg20[%c0_1, %c0_2] : memref<8x128xbf16, #tpu.memory_space<vmem>>, vector<8x128xbf16>
    %cst = arith.constant dense<0.000000e+00> : vector<16x128xf32>
    %2 = tpu.matmul %0, %1, %cst {dimension_numbers = #tpu.dot_dimension_numbers<[1], [0], [0], [1], [0, 0, 1, 1], [], []>} : vector<16x8xbf16>, vector<8x128xbf16>, vector<16x128xf32> -> vector<16x128xf32>
    %c0_3 = arith.constant 0 : index
    %c0_4 = arith.constant 0 : index
    %3 = vector.load %arg3[%c0_3, %c0_4] : memref<8x8xbf16, #tpu.memory_space<vmem>>, vector<8x8xbf16>
    %c0_5 = arith.constant 0 : index
    %c0_6 = arith.constant 0 : index
    %4 = vector.load %arg21[%c0_5, %c0_6] : memref<8x128xbf16, #tpu.memory_space<vmem>>, vector<8x128xbf16>
    %cst_7 = arith.constant dense<0.000000e+00> : vector<8x128xf32>
    %5 = tpu.matmul %3, %4, %cst_7 {dimension_numbers = #tpu.dot_dimension_numbers<[1], [0], [0], [1], [0, 0, 1, 1], [], []>} : vector<8x8xbf16>, vector<8x128xbf16>, vector<8x128xf32> -> vector<8x128xf32>
    %c0_8 = arith.constant 0 : index
    %c0_9 = arith.constant 0 : index
    %6 = vector.load %arg2[%c0_8, %c0_9] : memref<8x32xbf16, #tpu.memory_space<vmem>>, vector<8x32xbf16>
    %c0_10 = arith.constant 0 : index
    %c0_11 = arith.constant 0 : index
    %7 = vector.load %arg22[%c0_10, %c0_11] : memref<32x64xbf16, #tpu.memory_space<vmem>>, vector<32x64xbf16>
    %cst_12 = arith.constant dense<0.000000e+00> : vector<8x64xf32>
    %8 = tpu.matmul %6, %7, %cst_12 {dimension_numbers = #tpu.dot_dimension_numbers<[1], [0], [0], [1], [0, 0, 1, 1], [], []>} : vector<8x32xbf16>, vector<32x64xbf16>, vector<8x64xf32> -> vector<8x64xf32>
    %9 = arith.truncf %2 : vector<16x128xf32> to vector<16x128xbf16>
    %10 = arith.truncf %5 : vector<8x128xf32> to vector<8x128xbf16>
    %11 = tpu.iota {dimensions = array<i32: 1>} : vector<24x16xi32>
    %c0_13 = arith.constant 0 : index
    %c0_14 = arith.constant 0 : index
    %12 = vector.load %arg4[%c0_13, %c0_14] : memref<24x1xi32, #tpu.memory_space<vmem>>, vector<24x1xi32>
    %13 = vector.broadcast %12 : vector<24x1xi32> to vector<24x16xi32>
    %14 = arith.cmpi eq, %11, %13 : vector<24x16xi32>
    %15 = arith.extui %14 : vector<24x16xi1> to vector<24x16xi32>
    %16 = arith.sitofp %15 : vector<24x16xi32> to vector<24x16xf32>
    %17 = arith.truncf %16 : vector<24x16xf32> to vector<24x16xbf16>
    %cst_15 = arith.constant dense<0.000000e+00> : vector<24x128xf32>
    %18 = tpu.matmul %17, %9, %cst_15 {dimension_numbers = #tpu.dot_dimension_numbers<[1], [0], [0], [1], [0, 0, 1, 1], [], []>} : vector<24x16xbf16>, vector<16x128xbf16>, vector<24x128xf32> -> vector<24x128xf32>
    %19 = tpu.iota {dimensions = array<i32: 1>} : vector<24x16xi32>
    %c0_16 = arith.constant 0 : index
    %c0_17 = arith.constant 0 : index
    %20 = vector.load %arg5[%c0_16, %c0_17] : memref<24x1xi32, #tpu.memory_space<vmem>>, vector<24x1xi32>
    %21 = vector.broadcast %20 : vector<24x1xi32> to vector<24x16xi32>
    %22 = arith.cmpi eq, %19, %21 : vector<24x16xi32>
    %23 = arith.extui %22 : vector<24x16xi1> to vector<24x16xi32>
    %24 = arith.sitofp %23 : vector<24x16xi32> to vector<24x16xf32>
    %25 = arith.truncf %24 : vector<24x16xf32> to vector<24x16xbf16>
    %cst_18 = arith.constant dense<0.000000e+00> : vector<24x128xf32>
    %26 = tpu.matmul %25, %9, %cst_18 {dimension_numbers = #tpu.dot_dimension_numbers<[1], [0], [0], [1], [0, 0, 1, 1], [], []>} : vector<24x16xbf16>, vector<16x128xbf16>, vector<24x128xf32> -> vector<24x128xf32>
    %27 = tpu.iota {dimensions = array<i32: 1>} : vector<24x8xi32>
    %c0_19 = arith.constant 0 : index
    %c0_20 = arith.constant 0 : index
    %28 = vector.load %arg6[%c0_19, %c0_20] : memref<24x1xi32, #tpu.memory_space<vmem>>, vector<24x1xi32>
    %29 = vector.broadcast %28 : vector<24x1xi32> to vector<24x8xi32>
    %30 = arith.cmpi eq, %27, %29 : vector<24x8xi32>
    %31 = arith.extui %30 : vector<24x8xi1> to vector<24x8xi32>
    %32 = arith.sitofp %31 : vector<24x8xi32> to vector<24x8xf32>
    %33 = arith.truncf %32 : vector<24x8xf32> to vector<24x8xbf16>
    %cst_21 = arith.constant dense<0.000000e+00> : vector<24x128xf32>
    %34 = tpu.matmul %33, %10, %cst_21 {dimension_numbers = #tpu.dot_dimension_numbers<[1], [0], [0], [1], [0, 0, 1, 1], [], []>} : vector<24x8xbf16>, vector<8x128xbf16>, vector<24x128xf32> -> vector<24x128xf32>
    %35 = vector.extract_strided_slice %18 {offsets = [0, 0], sizes = [24, 32], strides = [1, 1]} : vector<24x128xf32> to vector<24x32xf32>
    %36 = vector.extract_strided_slice %26 {offsets = [0, 32], sizes = [24, 32], strides = [1, 1]} : vector<24x128xf32> to vector<24x32xf32>
    %37 = arith.addf %35, %36 : vector<24x32xf32>
    %c0_22 = arith.constant 0 : index
    %c0_23 = arith.constant 0 : index
    %38 = vector.load %arg1[%c0_22, %c0_23] : memref<24x8xbf16, #tpu.memory_space<vmem>>, vector<24x8xbf16>
    %c0_24 = arith.constant 0 : index
    %c0_25 = arith.constant 0 : index
    %39 = vector.load %arg23[%c0_24, %c0_25] : memref<8x32xbf16, #tpu.memory_space<vmem>>, vector<8x32xbf16>
    %cst_26 = arith.constant dense<0.000000e+00> : vector<24x32xf32>
    %40 = tpu.matmul %38, %39, %cst_26 {dimension_numbers = #tpu.dot_dimension_numbers<[1], [0], [0], [1], [0, 0, 1, 1], [], []>} : vector<24x8xbf16>, vector<8x32xbf16>, vector<24x32xf32> -> vector<24x32xf32>
    %41 = arith.addf %37, %40 : vector<24x32xf32>
    %42 = vector.extract_strided_slice %34 {offsets = [0, 0], sizes = [24, 32], strides = [1, 1]} : vector<24x128xf32> to vector<24x32xf32>
    %43 = arith.addf %41, %42 : vector<24x32xf32>
    %c0_27 = arith.constant 0 : index
    %c0_28 = arith.constant 0 : index
    %44 = vector.load %arg24[%c0_27, %c0_28] : memref<1x32xf32, #tpu.memory_space<vmem>>, vector<1x32xf32>
    %45 = vector.broadcast %44 : vector<1x32xf32> to vector<24x32xf32>
    %46 = arith.addf %43, %45 : vector<24x32xf32>
    %cst_29 = arith.constant 0.000000e+00 : f32
    %47 = vector.broadcast %cst_29 : f32 to vector<24x32xf32>
    %48 = arith.maximumf %46, %47 : vector<24x32xf32>
    %49 = arith.truncf %48 : vector<24x32xf32> to vector<24x32xbf16>
    %c0_30 = arith.constant 0 : index
    %c0_31 = arith.constant 0 : index
    %50 = vector.load %arg25[%c0_30, %c0_31] : memref<32x128xbf16, #tpu.memory_space<vmem>>, vector<32x128xbf16>
    %cst_32 = arith.constant dense<0.000000e+00> : vector<24x128xf32>
    %51 = tpu.matmul %49, %50, %cst_32 {dimension_numbers = #tpu.dot_dimension_numbers<[1], [0], [0], [1], [0, 0, 1, 1], [], []>} : vector<24x32xbf16>, vector<32x128xbf16>, vector<24x128xf32> -> vector<24x128xf32>
    %c0_33 = arith.constant 0 : index
    %c0_34 = arith.constant 0 : index
    %52 = vector.load %arg26[%c0_33, %c0_34] : memref<1x128xf32, #tpu.memory_space<vmem>>, vector<1x128xf32>
    %53 = vector.broadcast %52 : vector<1x128xf32> to vector<24x128xf32>
    %54 = arith.addf %51, %53 : vector<24x128xf32>
    %55 = tpu.iota {dimensions = array<i32: 0>} : vector<24x1xi32>
    %c24_i32 = arith.constant 24 : i32
    %56 = vector.broadcast %c24_i32 : i32 to vector<24x1xi32>
    %57 = arith.cmpi slt, %55, %56 : vector<24x1xi32>
    %58 = arith.extui %57 : vector<24x1xi1> to vector<24x1xi32>
    %59 = arith.sitofp %58 : vector<24x1xi32> to vector<24x1xf32>
    %60 = vector.broadcast %59 : vector<24x1xf32> to vector<24x128xf32>
    %61 = arith.mulf %54, %60 : vector<24x128xf32>
    %c0_35 = arith.constant 0 : index
    %c0_36 = arith.constant 0 : index
    %62 = vector.load %arg53[%c0_35, %c0_36] : memref<24x128xf32, #tpu.memory_space<vmem>>, vector<24x128xf32>
    tpu.vector_store %arg53[%c0_35, %c0_36], %61 {strides = array<i32>} : memref<24x128xf32, #tpu.memory_space<vmem>>, vector<24x128xf32>,
    %63 = arith.truncf %61 : vector<24x128xf32> to vector<24x128xbf16>
    %64 = vector.extract_strided_slice %18 {offsets = [0, 64], sizes = [24, 32], strides = [1, 1]} : vector<24x128xf32> to vector<24x32xf32>
    %c0_37 = arith.constant 0 : index
    %c0_38 = arith.constant 0 : index
    %65 = vector.load %arg27[%c0_37, %c0_38] : memref<128x32xbf16, #tpu.memory_space<vmem>>, vector<128x32xbf16>
    %cst_39 = arith.constant dense<0.000000e+00> : vector<24x32xf32>
    %66 = tpu.matmul %63, %65, %cst_39 {dimension_numbers = #tpu.dot_dimension_numbers<[1], [0], [0], [1], [0, 0, 1, 1], [], []>} : vector<24x128xbf16>, vector<128x32xbf16>, vector<24x32xf32> -> vector<24x32xf32>
    %67 = arith.addf %64, %66 : vector<24x32xf32>
    %68 = tpu.iota {dimensions = array<i32: 0>} : vector<16x24xi32>
    %c0_40 = arith.constant 0 : index
    %c0_41 = arith.constant 0 : index
    %69 = vector.load %arg7[%c0_40, %c0_41] : memref<1x24xi32, #tpu.memory_space<vmem>>, vector<1x24xi32>
    %70 = vector.broadcast %69 : vector<1x24xi32> to vector<16x24xi32>
    %71 = arith.cmpi eq, %68, %70 : vector<16x24xi32>
    %72 = arith.extui %71 : vector<16x24xi1> to vector<16x24xi32>
    %73 = arith.sitofp %72 : vector<16x24xi32> to vector<16x24xf32>
    %74 = arith.truncf %73 : vector<16x24xf32> to vector<16x24xbf16>
    %75 = arith.truncf %67 : vector<24x32xf32> to vector<24x32xbf16>
    %cst_42 = arith.constant dense<0.000000e+00> : vector<16x32xf32>
    %76 = tpu.matmul %74, %75, %cst_42 {dimension_numbers = #tpu.dot_dimension_numbers<[1], [0], [0], [1], [0, 0, 1, 1], [], []>} : vector<16x24xbf16>, vector<24x32xbf16>, vector<16x32xf32> -> vector<16x32xf32>
    %c0_43 = arith.constant 0 : index
    %c0_44 = arith.constant 0 : index
    %77 = vector.load %arg28[%c0_43, %c0_44] : memref<1x32xf32, #tpu.memory_space<vmem>>, vector<1x32xf32>
    %78 = vector.broadcast %77 : vector<1x32xf32> to vector<16x32xf32>
    %79 = arith.addf %76, %78 : vector<16x32xf32>
    %cst_45 = arith.constant 0.000000e+00 : f32
    %80 = vector.broadcast %cst_45 : f32 to vector<16x32xf32>
    %81 = arith.maximumf %79, %80 : vector<16x32xf32>
    %82 = arith.truncf %81 : vector<16x32xf32> to vector<16x32xbf16>
    %c0_46 = arith.constant 0 : index
    %c0_47 = arith.constant 0 : index
    %83 = vector.load %arg29[%c0_46, %c0_47] : memref<32x32xbf16, #tpu.memory_space<vmem>>, vector<32x32xbf16>
    %cst_48 = arith.constant dense<0.000000e+00> : vector<16x32xf32>
    %84 = tpu.matmul %82, %83, %cst_48 {dimension_numbers = #tpu.dot_dimension_numbers<[1], [0], [0], [1], [0, 0, 1, 1], [], []>} : vector<16x32xbf16>, vector<32x32xbf16>, vector<16x32xf32> -> vector<16x32xf32>
    %c0_49 = arith.constant 0 : index
    %c0_50 = arith.constant 0 : index
    %85 = vector.load %arg30[%c0_49, %c0_50] : memref<1x32xf32, #tpu.memory_space<vmem>>, vector<1x32xf32>
    %86 = vector.broadcast %85 : vector<1x32xf32> to vector<16x32xf32>
    %87 = arith.addf %84, %86 : vector<16x32xf32>
    %88 = tpu.iota {dimensions = array<i32: 1>} : vector<16x8xi32>
    %c0_51 = arith.constant 0 : index
    %c0_52 = arith.constant 0 : index
    %89 = vector.load %arg8[%c0_51, %c0_52] : memref<16x1xi32, #tpu.memory_space<vmem>>, vector<16x1xi32>
    %90 = vector.broadcast %89 : vector<16x1xi32> to vector<16x8xi32>
    %91 = arith.cmpi eq, %88, %90 : vector<16x8xi32>
    %92 = arith.extui %91 : vector<16x8xi1> to vector<16x8xi32>
    %93 = arith.sitofp %92 : vector<16x8xi32> to vector<16x8xf32>
    %94 = arith.truncf %93 : vector<16x8xf32> to vector<16x8xbf16>
    %cst_53 = arith.constant dense<0.000000e+00> : vector<16x128xf32>
    %95 = tpu.matmul %94, %10, %cst_53 {dimension_numbers = #tpu.dot_dimension_numbers<[1], [0], [0], [1], [0, 0, 1, 1], [], []>} : vector<16x8xbf16>, vector<8x128xbf16>, vector<16x128xf32> -> vector<16x128xf32>
    %96 = vector.extract_strided_slice %2 {offsets = [0, 96], sizes = [16, 32], strides = [1, 1]} : vector<16x128xf32> to vector<16x32xf32>
    %97 = arith.truncf %87 : vector<16x32xf32> to vector<16x32xbf16>
    %c0_54 = arith.constant 0 : index
    %c0_55 = arith.constant 0 : index
    %98 = vector.load %arg31[%c0_54, %c0_55] : memref<32x32xbf16, #tpu.memory_space<vmem>>, vector<32x32xbf16>
    %cst_56 = arith.constant dense<0.000000e+00> : vector<16x32xf32>
    %99 = tpu.matmul %97, %98, %cst_56 {dimension_numbers = #tpu.dot_dimension_numbers<[1], [0], [0], [1], [0, 0, 1, 1], [], []>} : vector<16x32xbf16>, vector<32x32xbf16>, vector<16x32xf32> -> vector<16x32xf32>
    %100 = arith.addf %96, %99 : vector<16x32xf32>
    %101 = vector.extract_strided_slice %95 {offsets = [0, 32], sizes = [16, 32], strides = [1, 1]} : vector<16x128xf32> to vector<16x32xf32>
    %102 = arith.addf %100, %101 : vector<16x32xf32>
    %c0_57 = arith.constant 0 : index
    %c0_58 = arith.constant 0 : index
    %103 = vector.load %arg32[%c0_57, %c0_58] : memref<1x32xf32, #tpu.memory_space<vmem>>, vector<1x32xf32>
    %104 = vector.broadcast %103 : vector<1x32xf32> to vector<16x32xf32>
    %105 = arith.addf %102, %104 : vector<16x32xf32>
    %cst_59 = arith.constant 0.000000e+00 : f32
    %106 = vector.broadcast %cst_59 : f32 to vector<16x32xf32>
    %107 = arith.maximumf %105, %106 : vector<16x32xf32>
    %108 = arith.truncf %107 : vector<16x32xf32> to vector<16x32xbf16>
    %c0_60 = arith.constant 0 : index
    %c0_61 = arith.constant 0 : index
    %109 = vector.load %arg33[%c0_60, %c0_61] : memref<32x128xbf16, #tpu.memory_space<vmem>>, vector<32x128xbf16>
    %cst_62 = arith.constant dense<0.000000e+00> : vector<16x128xf32>
    %110 = tpu.matmul %108, %109, %cst_62 {dimension_numbers = #tpu.dot_dimension_numbers<[1], [0], [0], [1], [0, 0, 1, 1], [], []>} : vector<16x32xbf16>, vector<32x128xbf16>, vector<16x128xf32> -> vector<16x128xf32>
    %c0_63 = arith.constant 0 : index
    %c0_64 = arith.constant 0 : index
    %111 = vector.load %arg34[%c0_63, %c0_64] : memref<1x128xf32, #tpu.memory_space<vmem>>, vector<1x128xf32>
    %112 = vector.broadcast %111 : vector<1x128xf32> to vector<16x128xf32>
    %113 = arith.addf %110, %112 : vector<16x128xf32>
    %114 = tpu.iota {dimensions = array<i32: 0>} : vector<16x1xi32>
    %c16_i32 = arith.constant 16 : i32
    %115 = vector.broadcast %c16_i32 : i32 to vector<16x1xi32>
    %116 = arith.cmpi slt, %114, %115 : vector<16x1xi32>
    %117 = arith.extui %116 : vector<16x1xi1> to vector<16x1xi32>
    %118 = arith.sitofp %117 : vector<16x1xi32> to vector<16x1xf32>
    %119 = vector.broadcast %118 : vector<16x1xf32> to vector<16x128xf32>
    %120 = arith.mulf %113, %119 : vector<16x128xf32>
    %c0_65 = arith.constant 0 : index
    %c0_66 = arith.constant 0 : index
    %121 = vector.load %arg54[%c0_65, %c0_66] : memref<16x128xf32, #tpu.memory_space<vmem>>, vector<16x128xf32>
    tpu.vector_store %arg54[%c0_65, %c0_66], %120 {strides = array<i32>} : memref<16x128xf32, #tpu.memory_space<vmem>>, vector<16x128xf32>,
    %122 = arith.truncf %120 : vector<16x128xf32> to vector<16x128xbf16>
    %123 = tpu.iota {dimensions = array<i32: 1>} : vector<16x8xi32>
    %c0_67 = arith.constant 0 : index
    %c0_68 = arith.constant 0 : index
    %124 = vector.load %arg9[%c0_67, %c0_68] : memref<16x1xi32, #tpu.memory_space<vmem>>, vector<16x1xi32>
    %125 = vector.broadcast %124 : vector<16x1xi32> to vector<16x8xi32>
    %126 = arith.cmpi eq, %123, %125 : vector<16x8xi32>
    %127 = arith.extui %126 : vector<16x8xi1> to vector<16x8xi32>
    %128 = arith.sitofp %127 : vector<16x8xi32> to vector<16x8xf32>
    %129 = arith.truncf %128 : vector<16x8xf32> to vector<16x8xbf16>
    %130 = arith.truncf %8 : vector<8x64xf32> to vector<8x64xbf16>
    %cst_69 = arith.constant dense<0.000000e+00> : vector<16x64xf32>
    %131 = tpu.matmul %129, %130, %cst_69 {dimension_numbers = #tpu.dot_dimension_numbers<[1], [0], [0], [1], [0, 0, 1, 1], [], []>} : vector<16x8xbf16>, vector<8x64xbf16>, vector<16x64xf32> -> vector<16x64xf32>
    %132 = tpu.iota {dimensions = array<i32: 0>} : vector<8x16xi32>
    %c0_70 = arith.constant 0 : index
    %c0_71 = arith.constant 0 : index
    %133 = vector.load %arg10[%c0_70, %c0_71] : memref<1x16xi32, #tpu.memory_space<vmem>>, vector<1x16xi32>
    %134 = vector.broadcast %133 : vector<1x16xi32> to vector<8x16xi32>
    %135 = arith.cmpi eq, %132, %134 : vector<8x16xi32>
    %136 = arith.extui %135 : vector<8x16xi1> to vector<8x16xi32>
    %137 = arith.sitofp %136 : vector<8x16xi32> to vector<8x16xf32>
    %138 = arith.truncf %137 : vector<8x16xf32> to vector<8x16xbf16>
    %139 = vector.extract_strided_slice %131 {offsets = [0, 0], sizes = [16, 32], strides = [1, 1]} : vector<16x64xf32> to vector<16x32xf32>
    %140 = arith.truncf %139 : vector<16x32xf32> to vector<16x32xbf16>
    %cst_72 = arith.constant dense<0.000000e+00> : vector<8x32xf32>
    %141 = tpu.matmul %138, %140, %cst_72 {dimension_numbers = #tpu.dot_dimension_numbers<[1], [0], [0], [1], [0, 0, 1, 1], [], []>} : vector<8x16xbf16>, vector<16x32xbf16>, vector<8x32xf32> -> vector<8x32xf32>
    %c0_73 = arith.constant 0 : index
    %c0_74 = arith.constant 0 : index
    %142 = vector.load %arg35[%c0_73, %c0_74] : memref<1x32xf32, #tpu.memory_space<vmem>>, vector<1x32xf32>
    %143 = vector.broadcast %142 : vector<1x32xf32> to vector<8x32xf32>
    %144 = arith.addf %141, %143 : vector<8x32xf32>
    %cst_75 = arith.constant 0.000000e+00 : f32
    %145 = vector.broadcast %cst_75 : f32 to vector<8x32xf32>
    %146 = arith.maximumf %144, %145 : vector<8x32xf32>
    %147 = arith.truncf %146 : vector<8x32xf32> to vector<8x32xbf16>
    %c0_76 = arith.constant 0 : index
    %c0_77 = arith.constant 0 : index
    %148 = vector.load %arg36[%c0_76, %c0_77] : memref<32x32xbf16, #tpu.memory_space<vmem>>, vector<32x32xbf16>
    %cst_78 = arith.constant dense<0.000000e+00> : vector<8x32xf32>
    %149 = tpu.matmul %147, %148, %cst_78 {dimension_numbers = #tpu.dot_dimension_numbers<[1], [0], [0], [1], [0, 0, 1, 1], [], []>} : vector<8x32xbf16>, vector<32x32xbf16>, vector<8x32xf32> -> vector<8x32xf32>
    %c0_79 = arith.constant 0 : index
    %c0_80 = arith.constant 0 : index
    %150 = vector.load %arg37[%c0_79, %c0_80] : memref<1x32xf32, #tpu.memory_space<vmem>>, vector<1x32xf32>
    %151 = vector.broadcast %150 : vector<1x32xf32> to vector<8x32xf32>
    %152 = arith.addf %149, %151 : vector<8x32xf32>
    %c0_81 = arith.constant 0 : index
    %c0_82 = arith.constant 0 : index
    %153 = vector.load %arg38[%c0_81, %c0_82] : memref<128x32xbf16, #tpu.memory_space<vmem>>, vector<128x32xbf16>
    %cst_83 = arith.constant dense<0.000000e+00> : vector<16x32xf32>
    %154 = tpu.matmul %122, %153, %cst_83 {dimension_numbers = #tpu.dot_dimension_numbers<[1], [0], [0], [1], [0, 0, 1, 1], [], []>} : vector<16x128xbf16>, vector<128x32xbf16>, vector<16x32xf32> -> vector<16x32xf32>
    %155 = tpu.iota {dimensions = array<i32: 1>} : vector<16x16xi32>
    %c0_84 = arith.constant 0 : index
    %c0_85 = arith.constant 0 : index
    %156 = vector.load %arg11[%c0_84, %c0_85] : memref<16x1xi32, #tpu.memory_space<vmem>>, vector<16x1xi32>
    %157 = vector.broadcast %156 : vector<16x1xi32> to vector<16x16xi32>
    %158 = arith.cmpi eq, %155, %157 : vector<16x16xi32>
    %159 = arith.extui %158 : vector<16x16xi1> to vector<16x16xi32>
    %160 = arith.sitofp %159 : vector<16x16xi32> to vector<16x16xf32>
    %161 = arith.truncf %160 : vector<16x16xf32> to vector<16x16xbf16>
    %162 = arith.truncf %154 : vector<16x32xf32> to vector<16x32xbf16>
    %cst_86 = arith.constant dense<0.000000e+00> : vector<16x32xf32>
    %163 = tpu.matmul %161, %162, %cst_86 {dimension_numbers = #tpu.dot_dimension_numbers<[1], [0], [0], [1], [0, 0, 1, 1], [], []>} : vector<16x16xbf16>, vector<16x32xbf16>, vector<16x32xf32> -> vector<16x32xf32>
    %164 = tpu.iota {dimensions = array<i32: 0>} : vector<8x16xi32>
    %c0_87 = arith.constant 0 : index
    %c0_88 = arith.constant 0 : index
    %165 = vector.load %arg12[%c0_87, %c0_88] : memref<1x16xi32, #tpu.memory_space<vmem>>, vector<1x16xi32>
    %166 = vector.broadcast %165 : vector<1x16xi32> to vector<8x16xi32>
    %167 = arith.cmpi eq, %164, %166 : vector<8x16xi32>
    %168 = arith.extui %167 : vector<8x16xi1> to vector<8x16xi32>
    %169 = arith.sitofp %168 : vector<8x16xi32> to vector<8x16xf32>
    %170 = arith.truncf %169 : vector<8x16xf32> to vector<8x16xbf16>
    %171 = arith.truncf %163 : vector<16x32xf32> to vector<16x32xbf16>
    %cst_89 = arith.constant dense<0.000000e+00> : vector<8x32xf32>
    %172 = tpu.matmul %170, %171, %cst_89 {dimension_numbers = #tpu.dot_dimension_numbers<[1], [0], [0], [1], [0, 0, 1, 1], [], []>} : vector<8x16xbf16>, vector<16x32xbf16>, vector<8x32xf32> -> vector<8x32xf32>
    %c0_90 = arith.constant 0 : index
    %c0_91 = arith.constant 0 : index
    %173 = vector.load %arg39[%c0_90, %c0_91] : memref<1x32xf32, #tpu.memory_space<vmem>>, vector<1x32xf32>
    %174 = vector.broadcast %173 : vector<1x32xf32> to vector<8x32xf32>
    %175 = arith.addf %172, %174 : vector<8x32xf32>
    %cst_92 = arith.constant 0.000000e+00 : f32
    %176 = vector.broadcast %cst_92 : f32 to vector<8x32xf32>
    %177 = arith.maximumf %175, %176 : vector<8x32xf32>
    %178 = arith.truncf %177 : vector<8x32xf32> to vector<8x32xbf16>
    %c0_93 = arith.constant 0 : index
    %c0_94 = arith.constant 0 : index
    %179 = vector.load %arg40[%c0_93, %c0_94] : memref<32x32xbf16, #tpu.memory_space<vmem>>, vector<32x32xbf16>
    %cst_95 = arith.constant dense<0.000000e+00> : vector<8x32xf32>
    %180 = tpu.matmul %178, %179, %cst_95 {dimension_numbers = #tpu.dot_dimension_numbers<[1], [0], [0], [1], [0, 0, 1, 1], [], []>} : vector<8x32xbf16>, vector<32x32xbf16>, vector<8x32xf32> -> vector<8x32xf32>
    %c0_96 = arith.constant 0 : index
    %c0_97 = arith.constant 0 : index
    %181 = vector.load %arg41[%c0_96, %c0_97] : memref<1x32xf32, #tpu.memory_space<vmem>>, vector<1x32xf32>
    %182 = vector.broadcast %181 : vector<1x32xf32> to vector<8x32xf32>
    %183 = arith.addf %180, %182 : vector<8x32xf32>
    %184 = tpu.iota {dimensions = array<i32: 1>} : vector<8x8xi32>
    %c0_98 = arith.constant 0 : index
    %c0_99 = arith.constant 0 : index
    %185 = vector.load %arg13[%c0_98, %c0_99] : memref<8x1xi32, #tpu.memory_space<vmem>>, vector<8x1xi32>
    %186 = vector.broadcast %185 : vector<8x1xi32> to vector<8x8xi32>
    %187 = arith.cmpi eq, %184, %186 : vector<8x8xi32>
    %188 = arith.extui %187 : vector<8x8xi1> to vector<8x8xi32>
    %189 = arith.sitofp %188 : vector<8x8xi32> to vector<8x8xf32>
    %190 = arith.truncf %189 : vector<8x8xf32> to vector<8x8xbf16>
    %cst_100 = arith.constant dense<0.000000e+00> : vector<8x128xf32>
    %191 = tpu.matmul %190, %10, %cst_100 {dimension_numbers = #tpu.dot_dimension_numbers<[1], [0], [0], [1], [0, 0, 1, 1], [], []>} : vector<8x8xbf16>, vector<8x128xbf16>, vector<8x128xf32> -> vector<8x128xf32>
    %192 = arith.truncf %183 : vector<8x32xf32> to vector<8x32xbf16>
    %c0_101 = arith.constant 0 : index
    %c0_102 = arith.constant 0 : index
    %193 = vector.load %arg42[%c0_101, %c0_102] : memref<32x32xbf16, #tpu.memory_space<vmem>>, vector<32x32xbf16>
    %cst_103 = arith.constant dense<0.000000e+00> : vector<8x32xf32>
    %194 = tpu.matmul %192, %193, %cst_103 {dimension_numbers = #tpu.dot_dimension_numbers<[1], [0], [0], [1], [0, 0, 1, 1], [], []>} : vector<8x32xbf16>, vector<32x32xbf16>, vector<8x32xf32> -> vector<8x32xf32>
    %195 = vector.extract_strided_slice %8 {offsets = [0, 32], sizes = [8, 32], strides = [1, 1]} : vector<8x64xf32> to vector<8x32xf32>
    %196 = arith.addf %194, %195 : vector<8x32xf32>
    %197 = arith.truncf %152 : vector<8x32xf32> to vector<8x32xbf16>
    %c0_104 = arith.constant 0 : index
    %c0_105 = arith.constant 0 : index
    %198 = vector.load %arg43[%c0_104, %c0_105] : memref<32x32xbf16, #tpu.memory_space<vmem>>, vector<32x32xbf16>
    %cst_106 = arith.constant dense<0.000000e+00> : vector<8x32xf32>
    %199 = tpu.matmul %197, %198, %cst_106 {dimension_numbers = #tpu.dot_dimension_numbers<[1], [0], [0], [1], [0, 0, 1, 1], [], []>} : vector<8x32xbf16>, vector<32x32xbf16>, vector<8x32xf32> -> vector<8x32xf32>
    %200 = arith.addf %196, %199 : vector<8x32xf32>
    %201 = vector.extract_strided_slice %191 {offsets = [0, 64], sizes = [8, 32], strides = [1, 1]} : vector<8x128xf32> to vector<8x32xf32>
    %202 = arith.addf %200, %201 : vector<8x32xf32>
    %c0_107 = arith.constant 0 : index
    %c0_108 = arith.constant 0 : index
    %203 = vector.load %arg44[%c0_107, %c0_108] : memref<1x32xf32, #tpu.memory_space<vmem>>, vector<1x32xf32>
    %204 = vector.broadcast %203 : vector<1x32xf32> to vector<8x32xf32>
    %205 = arith.addf %202, %204 : vector<8x32xf32>
    %cst_109 = arith.constant 0.000000e+00 : f32
    %206 = vector.broadcast %cst_109 : f32 to vector<8x32xf32>
    %207 = arith.maximumf %205, %206 : vector<8x32xf32>
    %208 = arith.truncf %207 : vector<8x32xf32> to vector<8x32xbf16>
    %c0_110 = arith.constant 0 : index
    %c0_111 = arith.constant 0 : index
    %209 = vector.load %arg45[%c0_110, %c0_111] : memref<32x128xbf16, #tpu.memory_space<vmem>>, vector<32x128xbf16>
    %cst_112 = arith.constant dense<0.000000e+00> : vector<8x128xf32>
    %210 = tpu.matmul %208, %209, %cst_112 {dimension_numbers = #tpu.dot_dimension_numbers<[1], [0], [0], [1], [0, 0, 1, 1], [], []>} : vector<8x32xbf16>, vector<32x128xbf16>, vector<8x128xf32> -> vector<8x128xf32>
    %c0_113 = arith.constant 0 : index
    %c0_114 = arith.constant 0 : index
    %211 = vector.load %arg46[%c0_113, %c0_114] : memref<1x128xf32, #tpu.memory_space<vmem>>, vector<1x128xf32>
    %212 = vector.broadcast %211 : vector<1x128xf32> to vector<8x128xf32>
    %213 = arith.addf %210, %212 : vector<8x128xf32>
    %214 = tpu.iota {dimensions = array<i32: 0>} : vector<8x1xi32>
    %c6_i32 = arith.constant 6 : i32
    %215 = vector.broadcast %c6_i32 : i32 to vector<8x1xi32>
    %216 = arith.cmpi slt, %214, %215 : vector<8x1xi32>
    %217 = arith.extui %216 : vector<8x1xi1> to vector<8x1xi32>
    %218 = arith.sitofp %217 : vector<8x1xi32> to vector<8x1xf32>
    %219 = vector.broadcast %218 : vector<8x1xf32> to vector<8x128xf32>
    %220 = arith.mulf %213, %219 : vector<8x128xf32>
    %c0_115 = arith.constant 0 : index
    %c0_116 = arith.constant 0 : index
    %221 = vector.load %arg55[%c0_115, %c0_116] : memref<8x128xf32, #tpu.memory_space<vmem>>, vector<8x128xf32>
    tpu.vector_store %arg55[%c0_115, %c0_116], %220 {strides = array<i32>} : memref<8x128xf32, #tpu.memory_space<vmem>>, vector<8x128xf32>,
    %222 = arith.truncf %220 : vector<8x128xf32> to vector<8x128xbf16>
    %c0_117 = arith.constant 0 : index
    %c0_118 = arith.constant 0 : index
    %223 = vector.load %arg17[%c0_117, %c0_118] : memref<8x1xf32, #tpu.memory_space<vmem>>, vector<8x1xf32>
    %224 = tpu.reciprocal %223 {approx = true} : vector<8x1xf32> -> vector<8x1xf32>
    %c0_119 = arith.constant 0 : index
    %c0_120 = arith.constant 0 : index
    %225 = vector.load %arg18[%c0_119, %c0_120] : memref<8x1xf32, #tpu.memory_space<vmem>>, vector<8x1xf32>
    %226 = tpu.reciprocal %225 {approx = true} : vector<8x1xf32> -> vector<8x1xf32>
    %c0_121 = arith.constant 0 : index
    %c0_122 = arith.constant 0 : index
    %227 = vector.load %arg19[%c0_121, %c0_122] : memref<8x1xf32, #tpu.memory_space<vmem>>, vector<8x1xf32>
    %228 = tpu.reciprocal %227 {approx = true} : vector<8x1xf32> -> vector<8x1xf32>
    %229 = tpu.iota {dimensions = array<i32: 0>} : vector<8x24xi32>
    %c0_123 = arith.constant 0 : index
    %c0_124 = arith.constant 0 : index
    %230 = vector.load %arg14[%c0_123, %c0_124] : memref<1x24xi32, #tpu.memory_space<vmem>>, vector<1x24xi32>
    %231 = vector.broadcast %230 : vector<1x24xi32> to vector<8x24xi32>
    %232 = arith.cmpi eq, %229, %231 : vector<8x24xi32>
    %233 = arith.extui %232 : vector<8x24xi1> to vector<8x24xi32>
    %234 = arith.sitofp %233 : vector<8x24xi32> to vector<8x24xf32>
    %235 = arith.truncf %234 : vector<8x24xf32> to vector<8x24xbf16>
    %cst_125 = arith.constant dense<0.000000e+00> : vector<8x128xf32>
    %236 = tpu.matmul %235, %63, %cst_125 {dimension_numbers = #tpu.dot_dimension_numbers<[1], [0], [0], [1], [0, 0, 1, 1], [], []>} : vector<8x24xbf16>, vector<24x128xbf16>, vector<8x128xf32> -> vector<8x128xf32>
    %237 = vector.broadcast %224 : vector<8x1xf32> to vector<8x128xf32>
    %238 = arith.mulf %236, %237 : vector<8x128xf32>
    %239 = tpu.iota {dimensions = array<i32: 0>} : vector<8x16xi32>
    %c0_126 = arith.constant 0 : index
    %c0_127 = arith.constant 0 : index
    %240 = vector.load %arg15[%c0_126, %c0_127] : memref<1x16xi32, #tpu.memory_space<vmem>>, vector<1x16xi32>
    %241 = vector.broadcast %240 : vector<1x16xi32> to vector<8x16xi32>
    %242 = arith.cmpi eq, %239, %241 : vector<8x16xi32>
    %243 = arith.extui %242 : vector<8x16xi1> to vector<8x16xi32>
    %244 = arith.sitofp %243 : vector<8x16xi32> to vector<8x16xf32>
    %245 = arith.truncf %244 : vector<8x16xf32> to vector<8x16xbf16>
    %cst_128 = arith.constant dense<0.000000e+00> : vector<8x128xf32>
    %246 = tpu.matmul %245, %122, %cst_128 {dimension_numbers = #tpu.dot_dimension_numbers<[1], [0], [0], [1], [0, 0, 1, 1], [], []>} : vector<8x16xbf16>, vector<16x128xbf16>, vector<8x128xf32> -> vector<8x128xf32>
    %247 = vector.broadcast %226 : vector<8x1xf32> to vector<8x128xf32>
    %248 = arith.mulf %246, %247 : vector<8x128xf32>
    %249 = tpu.iota {dimensions = array<i32: 0>} : vector<8x8xi32>
    %c0_129 = arith.constant 0 : index
    %c0_130 = arith.constant 0 : index
    %250 = vector.load %arg16[%c0_129, %c0_130] : memref<1x8xi32, #tpu.memory_space<vmem>>, vector<1x8xi32>
    %251 = vector.broadcast %250 : vector<1x8xi32> to vector<8x8xi32>
    %252 = arith.cmpi eq, %249, %251 : vector<8x8xi32>
    %253 = arith.extui %252 : vector<8x8xi1> to vector<8x8xi32>
    %254 = arith.sitofp %253 : vector<8x8xi32> to vector<8x8xf32>
    %255 = arith.truncf %254 : vector<8x8xf32> to vector<8x8xbf16>
    %cst_131 = arith.constant dense<0.000000e+00> : vector<8x128xf32>
    %256 = tpu.matmul %255, %222, %cst_131 {dimension_numbers = #tpu.dot_dimension_numbers<[1], [0], [0], [1], [0, 0, 1, 1], [], []>} : vector<8x8xbf16>, vector<8x128xbf16>, vector<8x128xf32> -> vector<8x128xf32>
    %257 = vector.broadcast %228 : vector<8x1xf32> to vector<8x128xf32>
    %258 = arith.mulf %256, %257 : vector<8x128xf32>
    %259 = vector.extract_strided_slice %5 {offsets = [0, 96], sizes = [8, 32], strides = [1, 1]} : vector<8x128xf32> to vector<8x32xf32>
    %260 = arith.truncf %248 : vector<8x128xf32> to vector<8x128xbf16>
    %c0_132 = arith.constant 0 : index
    %c0_133 = arith.constant 0 : index
    %261 = vector.load %arg47[%c0_132, %c0_133] : memref<128x32xbf16, #tpu.memory_space<vmem>>, vector<128x32xbf16>
    %cst_134 = arith.constant dense<0.000000e+00> : vector<8x32xf32>
    %262 = tpu.matmul %260, %261, %cst_134 {dimension_numbers = #tpu.dot_dimension_numbers<[1], [0], [0], [1], [0, 0, 1, 1], [], []>} : vector<8x128xbf16>, vector<128x32xbf16>, vector<8x32xf32> -> vector<8x32xf32>
    %263 = arith.addf %259, %262 : vector<8x32xf32>
    %264 = arith.truncf %238 : vector<8x128xf32> to vector<8x128xbf16>
    %c0_135 = arith.constant 0 : index
    %c0_136 = arith.constant 0 : index
    %265 = vector.load %arg48[%c0_135, %c0_136] : memref<128x32xbf16, #tpu.memory_space<vmem>>, vector<128x32xbf16>
    %cst_137 = arith.constant dense<0.000000e+00> : vector<8x32xf32>
    %266 = tpu.matmul %264, %265, %cst_137 {dimension_numbers = #tpu.dot_dimension_numbers<[1], [0], [0], [1], [0, 0, 1, 1], [], []>} : vector<8x128xbf16>, vector<128x32xbf16>, vector<8x32xf32> -> vector<8x32xf32>
    %267 = arith.addf %263, %266 : vector<8x32xf32>
    %268 = arith.truncf %258 : vector<8x128xf32> to vector<8x128xbf16>
    %c0_138 = arith.constant 0 : index
    %c0_139 = arith.constant 0 : index
    %269 = vector.load %arg49[%c0_138, %c0_139] : memref<128x32xbf16, #tpu.memory_space<vmem>>, vector<128x32xbf16>
    %cst_140 = arith.constant dense<0.000000e+00> : vector<8x32xf32>
    %270 = tpu.matmul %268, %269, %cst_140 {dimension_numbers = #tpu.dot_dimension_numbers<[1], [0], [0], [1], [0, 0, 1, 1], [], []>} : vector<8x128xbf16>, vector<128x32xbf16>, vector<8x32xf32> -> vector<8x32xf32>
    %271 = arith.addf %267, %270 : vector<8x32xf32>
    %c0_141 = arith.constant 0 : index
    %c0_142 = arith.constant 0 : index
    %272 = vector.load %arg50[%c0_141, %c0_142] : memref<1x32xf32, #tpu.memory_space<vmem>>, vector<1x32xf32>
    %273 = vector.broadcast %272 : vector<1x32xf32> to vector<8x32xf32>
    %274 = arith.addf %271, %273 : vector<8x32xf32>
    %cst_143 = arith.constant 0.000000e+00 : f32
    %275 = vector.broadcast %cst_143 : f32 to vector<8x32xf32>
    %276 = arith.maximumf %274, %275 : vector<8x32xf32>
    %277 = arith.truncf %276 : vector<8x32xf32> to vector<8x32xbf16>
    %c0_144 = arith.constant 0 : index
    %c0_145 = arith.constant 0 : index
    %278 = vector.load %arg51[%c0_144, %c0_145] : memref<32x128xbf16, #tpu.memory_space<vmem>>, vector<32x128xbf16>
    %cst_146 = arith.constant dense<0.000000e+00> : vector<8x128xf32>
    %279 = tpu.matmul %277, %278, %cst_146 {dimension_numbers = #tpu.dot_dimension_numbers<[1], [0], [0], [1], [0, 0, 1, 1], [], []>} : vector<8x32xbf16>, vector<32x128xbf16>, vector<8x128xf32> -> vector<8x128xf32>
    %c0_147 = arith.constant 0 : index
    %c0_148 = arith.constant 0 : index
    %280 = vector.load %arg52[%c0_147, %c0_148] : memref<1x128xf32, #tpu.memory_space<vmem>>, vector<1x128xf32>
    %281 = vector.broadcast %280 : vector<1x128xf32> to vector<8x128xf32>
    %282 = arith.addf %279, %281 : vector<8x128xf32>
    %283 = tpu.iota {dimensions = array<i32: 0>} : vector<8x1xi32>
    %c2_i32 = arith.constant 2 : i32
    %284 = vector.broadcast %c2_i32 : i32 to vector<8x1xi32>
    %285 = arith.cmpi slt, %283, %284 : vector<8x1xi32>
    %286 = arith.extui %285 : vector<8x1xi1> to vector<8x1xi32>
    %287 = arith.sitofp %286 : vector<8x1xi32> to vector<8x1xf32>
    %288 = vector.broadcast %287 : vector<8x1xf32> to vector<8x128xf32>
    %289 = arith.mulf %282, %288 : vector<8x128xf32>
    %c0_149 = arith.constant 0 : index
    %c0_150 = arith.constant 0 : index
    %290 = vector.load %arg56[%c0_149, %c0_150] : memref<8x128xf32, #tpu.memory_space<vmem>>, vector<8x128xf32>
    tpu.vector_store %arg56[%c0_149, %c0_150], %289 {strides = array<i32>} : memref<8x128xf32, #tpu.memory_space<vmem>>, vector<8x128xf32>,
    return
  }
}

</mosaic_0001>

<bundles_post_ra>
// kernel: metalayer_forward.1
= control target key start
LH: loop header
LB: loop body
LE: loop exit
PB: predicated region body
PF: predicated region fallthrough
CT: control target
= control target key end

     0   :  { %s3524_s6 = smov 1   ;;  %s3525_s10 = smov 2   ;;  %s4288_s0 = inlined_call_operand.smem [shape: u32[57], index: -1, kind: input, shape index: {}] }
   0x1   :  { %s3598_s5 = sld [smem:[%s4288_s0]]   ;;  %s3526_s14 = smov 3  }
   0x2   :  { %s3603_s9 = sld [smem:[%s4288_s0 + %s3524_s6]]   ;;  %s3527_s18 = smov 4  }
   0x3   :  { %s3608_s13 = sld [smem:[%s4288_s0 + %s3525_s10]]   ;;  %s3528_s22 = smov 5  }
   0x4   :  { %s3613_s17 = sld [smem:[%s4288_s0 + %s3526_s14]]   ;;  %s3529_s26 = smov 6  }
   0x5   :  { %s3618_s21 = sld [smem:[%s4288_s0 + %s3527_s18]]   ;;  %s3530_s30 = smov 7  }
   0x6   :  { %s3623_s25 = sld [smem:[%s4288_s0 + %s3528_s22]]   ;;  %s3531_s4 = smov 8  }
   0x7   :  { %s3628_s29 = sld [smem:[%s4288_s0 + %s3529_s26]]   ;;  %s3532_s10 = smov 9  }
   0x8   :  { %s3633_s3 = sld [smem:[%s4288_s0 + %s3530_s30]]   ;;  %s3533_s15 = smov 10  }
   0x9   :  { %s3638_s8 = sld [smem:[%s4288_s0 + %s3531_s4]]   ;;  %s3534_s20 = smov 11  }
   0xa   :  { %s3643_s14 = sld [smem:[%s4288_s0 + %s3532_s10]]   ;;  %s3535_s26 = smov 12  }
   0xb   :  { %s3648_s19 = sld [smem:[%s4288_s0 + %s3533_s15]]   ;;  %s3536_s1 = smov 13  }
   0xc   :  { %s3653_s24 = sld [smem:[%s4288_s0 + %s3534_s20]]   ;;  %s3537_s7 = smov 14  }
   0xd   :  { %s3658_s30 = sld [smem:[%s4288_s0 + %s3535_s26]]   ;;  %s3538_s15 = smov 15  }
   0xe   :  { %4305 = sst [smem:[#allocation8_spill]] %s3633_s3  ;;  %s3539_s22 = smov 16  }
   0xf   :  { %4306 = sst [smem:[#allocation9_spill]] %s3638_s8  ;;  %s3540_s28 = smov 17  }
  0x10   :  { %4307 = sst [smem:[#allocation10_spill]] %s3643_s14 }
  0x11   :  { %4308 = sst [smem:[#allocation11_spill]] %s3648_s19 }
  0x12   :  { %4309 = sst [smem:[#allocation12_spill]] %s3653_s24 }
  0x13   :  { %4310 = sst [smem:[#allocation13_spill]] %s3658_s30 }
  0x14   :  { %s3663_s6 = sld [smem:[%s4288_s0 + %s3536_s1]]  }
  0x15   :  { %s3668_s12 = sld [smem:[%s4288_s0 + %s3537_s7]]   ;;  %s3541_s7 = smov 18  }
  0x16   :  { %s3673_s20 = sld [smem:[%s4288_s0 + %s3538_s15]]   ;;  %s3542_s15 = smov 19  }
  0x17   :  { %s3678_s27 = sld [smem:[%s4288_s0 + %s3539_s22]]   ;;  %s3543_s22 = smov 20  }
  0x18   :  { %s3683_s4 = sld [smem:[%s4288_s0 + %s3540_s28]]   ;;  %s3544_s28 = smov 21  }
  0x1a   :  { %4311 = sst [smem:[#allocation14_spill]] %s3663_s6 }
  0x1b   :  { %4312 = sst [smem:[#allocation15_spill]] %s3668_s12 }
  0x1c   :  { %4313 = sst [smem:[#allocation16_spill]] %s3673_s20 }
  0x1d   :  { %4314 = sst [smem:[#allocation17_spill]] %s3678_s27 }
  0x1e   :  { %4315 = sst [smem:[#allocation18_spill]] %s3683_s4 }
  0x1f   :  { %s3688_s12 = sld [smem:[%s4288_s0 + %s3541_s7]]   ;;  %s3545_s7 = smov 22  }
  0x20   :  { %s3693_s20 = sld [smem:[%s4288_s0 + %s3542_s15]]   ;;  %s3546_s15 = smov 23  }
  0x21   :  { %s3698_s27 = sld [smem:[%s4288_s0 + %s3543_s22]]   ;;  %s3547_s22 = smov 24  }
  0x22   :  { %s3703_s4 = sld [smem:[%s4288_s0 + %s3544_s28]]   ;;  %s3548_s28 = smov 25  }
  0x23   :  { %s3708_s30 = sld [smem:[%s4288_s0 + %s3545_s7]]   ;;  %s3549_s7 = smov 26  }
  0x24   :  { %s3713_s19 = sld [smem:[%s4288_s0 + %s3546_s15]]   ;;  %s3550_s15 = smov 27  }
  0x25   :  { %4316 = sst [smem:[#allocation19_spill]] %s3688_s12 }
  0x26   :  { %4317 = sst [smem:[#allocation20_spill]] %s3693_s20 }
  0x27   :  { %s3718_s20 = sld [smem:[%s4288_s0 + %s3547_s22]]   ;;  %s3551_s22 = smov 28  }
  0x28   :  { %s3723_s12 = sld [smem:[%s4288_s0 + %s3548_s28]]   ;;  %s3552_s28 = smov 29  }
  0x29   :  { %s3728_s6 = sld [smem:[%s4288_s0 + %s3549_s7]]   ;;  %s3553_s7 = smov 30  }
  0x2a   :  { %s3733_s24 = sld [smem:[%s4288_s0 + %s3550_s15]]   ;;  %s3554_s15 = smov 31  }
  0x2b   :  { %s3738_s14 = sld [smem:[%s4288_s0 + %s3551_s22]]   ;;  %s3555_s22 = smov 32  }
  0x2c   :  { %s3743_s3 = sld [smem:[%s4288_s0 + %s3552_s28]]   ;;  %s3556_s28 = smov 33  }
  0x2d   :  { %s3748_s8 = sld [smem:[%s4288_s0 + %s3553_s7]]   ;;  %s3557_s7 = smov 34  }
  0x2f   :  { %4318 = sst [smem:[#allocation21_spill]] %s3728_s6 }
  0x30   :  { %s3753_s6 = sld [smem:[%s4288_s0 + %s3554_s15]]   ;;  %s3558_s15 = smov 35  }
  0x31   :  { %4319 = sst [smem:[#allocation22_spill]] %s3738_s14 }
  0x32   :  { %4320 = sst [smem:[#allocation23_spill]] %s3743_s3 }
  0x33   :  { %4321 = sst [smem:[#allocation24_spill]] %s3748_s8 }
  0x34   :  { %s3758_s14 = sld [smem:[%s4288_s0 + %s3555_s22]]   ;;  %s3559_s22 = smov 36  }
  0x35   :  { %s3763_s3 = sld [smem:[%s4288_s0 + %s3556_s28]]   ;;  %s3560_s28 = smov 37  }
  0x36   :  { %4322 = sst [smem:[#allocation25_spill]] %s3753_s6 }
  0x37   :  { %s3768_s8 = sld [smem:[%s4288_s0 + %s3557_s7]]   ;;  %s3561_s7 = smov 38  }
  0x38   :  { %s3773_s6 = sld [smem:[%s4288_s0 + %s3558_s15]]   ;;  %s3562_s15 = smov 39  }
  0x3a   :  { %4323 = sst [smem:[#allocation26_spill]] %s3758_s14 }
  0x3b   :  { %4324 = sst [smem:[#allocation27_spill]] %s3763_s3 }
  0x3c   :  { %s3778_s14 = sld [smem:[%s4288_s0 + %s3559_s22]]   ;;  %s3563_s22 = smov 40  }
  0x3d   :  { %4325 = sst [smem:[#allocation28_spill]] %s3768_s8 }
  0x3e   :  { %4326 = sst [smem:[#allocation29_spill]] %s3773_s6 }
  0x3f   :  { %s3783_s3 = sld [smem:[%s4288_s0 + %s3560_s28]]   ;;  %s3564_s28 = smov 41  }
  0x40   :  { %s3788_s8 = sld [smem:[%s4288_s0 + %s3561_s7]]   ;;  %s3565_s7 = smov 42  }
  0x41   :  { %s3793_s6 = sld [smem:[%s4288_s0 + %s3562_s15]]   ;;  %s3566_s15 = smov 43  }
  0x42   :  { %4327 = sst [smem:[#allocation30_spill]] %s3778_s14 }
  0x43   :  { %s3798_s14 = sld [smem:[%s4288_s0 + %s3563_s22]]   ;;  %s3567_s22 = smov 44  }
  0x45   :  { %4328 = sst [smem:[#allocation31_spill]] %s3783_s3 }
  0x46   :  { %4329 = sst [smem:[#allocation32_spill]] %s3788_s8 }
  0x47   :  { %4330 = sst [smem:[#allocation33_spill]] %s3793_s6 }
  0x48   :  { %s3803_s3 = sld [smem:[%s4288_s0 + %s3564_s28]]   ;;  %s3568_s28 = smov 45  }
  0x49   :  { %4331 = sst [smem:[#allocation34_spill]] %s3798_s14 }
  0x4a   :  { %s3808_s8 = sld [smem:[%s4288_s0 + %s3565_s7]]   ;;  %s3569_s7 = smov 46  }
  0x4b   :  { %s3813_s6 = sld [smem:[%s4288_s0 + %s3566_s15]]   ;;  %s3570_s15 = smov 47  }
  0x4c   :  { %s3818_s14 = sld [smem:[%s4288_s0 + %s3567_s22]]   ;;  %s3571_s22 = smov 48  }
  0x4e   :  { %4332 = sst [smem:[#allocation35_spill]] %s3803_s3 }
  0x4f   :  { %s3823_s3 = sld [smem:[%s4288_s0 + %s3568_s28]]   ;;  %s3572_s28 = smov 49  }
  0x50   :  { %4333 = sst [smem:[#allocation36_spill]] %s3808_s8 }
  0x51   :  { %4334 = sst [smem:[#allocation37_spill]] %s3813_s6 }
  0x52   :  { %4335 = sst [smem:[#allocation38_spill]] %s3818_s14 }
  0x53   :  { %s3828_s8 = sld [smem:[%s4288_s0 + %s3569_s7]]   ;;  %s3573_s7 = smov 50  }
  0x54   :  { %s3833_s6 = sld [smem:[%s4288_s0 + %s3570_s15]]   ;;  %s3574_s15 = smov 51  }
  0x55   :  { %4336 = sst [smem:[#allocation39_spill]] %s3823_s3 }
  0x56   :  { %s3838_s14 = sld [smem:[%s4288_s0 + %s3571_s22]]   ;;  %s3575_s22 = smov 52  }
  0x57   :  { %s3843_s3 = sld [smem:[%s4288_s0 + %s3572_s28]]   ;;  %s3576_s28 = smov 53  }
  0x59   :  { %4337 = sst [smem:[#allocation40_spill]] %s3828_s8 }
  0x5a   :  { %4338 = sst [smem:[#allocation41_spill]] %s3833_s6 }
  0x5b   :  { %s3848_s8 = sld [smem:[%s4288_s0 + %s3573_s7]]   ;;  %s3577_s7 = smov 54  }
  0x5c   :  { %4339 = sst [smem:[#allocation42_spill]] %s3838_s14 }
  0x5d   :  { %4340 = sst [smem:[#allocation43_spill]] %s3843_s3 }
  0x5e   :  { %s3853_s6 = sld [smem:[%s4288_s0 + %s3574_s15]]   ;;  %s3578_s15 = smov 55  }
  0x5f   :  { %s3858_s14 = sld [smem:[%s4288_s0 + %s3575_s22]]   ;;  %s3579_s22 = smov 56  }
  0x60   :  { %s3863_s3 = sld [smem:[%s4288_s0 + %s3576_s28]]  }
  0x61   :  { %4341 = sst [smem:[#allocation44_spill]] %s3848_s8 }
  0x62   :  { %s3868_s8 = sld [smem:[%s4288_s0 + %s3577_s7]]  }
  0x64   :  { %4342 = sst [smem:[#allocation45_spill]] %s3853_s6 }
  0x65   :  { %4343 = sst [smem:[#allocation46_spill]] %s3858_s14 }
  0x66   :  { %s3873_s6 = sld [smem:[%s4288_s0 + %s3578_s15]]  }
  0x67   :  { %s3878_s14 = sld [smem:[%s4288_s0 + %s3579_s22]]  }
  0x68   :  { %119 = vsyncpa [#allocation3], 0  ;;  %v230_v0 = vld [vmem:[%s3698_s27] sm:$0xf]  ;;  %vm240_vm0 = vcmask 1043456   ;;  %v3580_v1 = vmov 0.0  }
  0x69   :  { %3047 = vmatprep.subr.bf16.mxu0 %v3580_v1  ;;  %v242_v2 = vsel %vm240_vm0, %v230_v0, 0  ;;  %vm3581_vm1 = vmmov 0   ;;  %v3405_v3 = vld [vmem:[%s3598_s5] sm:$0xff]   ;;  %vm236_vm2 = vcmask 64512   ;;  %3053 = vmatprep.subr.bf16.mxu1 %v3580_v1  ;;  %v3582_v7 = vmov 0   ;;  %v478_v8 = vld [vmem:[%s3623_s25 + $0x10] sm:$0xff] }
  0x6a   :  { %3049 = vmatprep.mubr.msk.bf16.mxu0 %vm3581_vm1, %v3580_v1  ;;  %3048 = vmatpush3.bf16.msra.mxu0 %v242_v2  ;;  %v286_v4 = vld [vmem:[%s3703_s4] sm:$0xf]  ;;  %v477_v10 = vld [vmem:[%s3623_s25 + $0x8] sm:$0xff]  ;;  %v400_v13 = vld [vmem:[%s3618_s21 + $0x10] sm:$0xff] }
  0x6b   :  { %v476_v5 = vld [vmem:[%s3623_s25] sm:$0xff]  ;;  %v291_v6 = vsel %vm240_vm0, %v286_v4, 0  ;;  %3055 = vmatprep.mubr.msk.bf16.mxu1 %vm3581_vm1, %v3580_v1  ;;  %3403 = vset.pattern.permute.xlu0 %v3582_v7  ;;  %v399_v12 = vld [vmem:[%s3618_s21 + $0x8] sm:$0xff]  ;;  %v555_v17 = vld [vmem:[%s3628_s29 + $0x10] sm:$0xff] }
  0x6c   :  { %3054 = vmatpush3.bf16.msra.mxu1 %v291_v6  ;;  %v285_v9 = vld [vmem:[%s3613_s17] sm:$0xf]  ;;  %480 = vperm.xlu0 %3403, %v476_v5   ;;  %v554_v15 = vld [vmem:[%s3628_s29 + $0x8] sm:$0xff] }
  0x6d   :  { %3050 = vmatmul.mubr.msk.bf16.vlgmr.msra.gmra.mrb[0].mxu0 %vm236_vm2, %v3405_v3  ;;  %3404 = vset.pattern.permute.xlu1 %v3582_v7  ;;  %v398_v11 = vld [vmem:[%s3618_s21] sm:$0xff]  ;;  %v3407_v18 = vld [vmem:[%s3708_s30 + $0x8] sm:$0xff]  }
  0x6e   :  { %486 = vperm.xlu1 %3404, %v478_v8   ;;  %3059 = vmatprep.subr.bf16.mxu1 %v3580_v1  ;;  %v553_v14 = vld [vmem:[%s3628_s29] sm:$0xff] }
  0x6f   :  { %3056 = vmatmul.mubr.msk.bf16.vlgmr.msra.gmra.mrb[0].mxu1 %vm236_vm2, %v285_v9  ;;  %v3406_v16 = vld [vmem:[%s3708_s30] sm:$0xff]  }
  0x70   :  { %483 = vperm.xlu0 %3403, %v477_v10   ;;  %3063 = vmatprep.mubr.msk.bf16.mxu1 %vm3581_vm1, %v3580_v1 }
  0x71   :  { %3060 = vmatpush3.bf16.msra.mxu1 %v3406_v16 }
  0x72   :  { %402 = vperm.xlu1 %3404, %v398_v11   ;;  %3061 = vmatprep.subr.bf16.mxu1 %v3580_v1 }
  0x74   :  { %405 = vperm.xlu0 %3403, %v399_v12  }
  0x75   :  { %3062 = vmatpush3.bf16.msra.mxu1 %v3407_v18 }
  0x76   :  { %408 = vperm.xlu1 %3404, %v400_v13  }
  0x78   :  { %557 = vperm.xlu0 %3403, %v553_v14  }
  0x7a   :  { %560 = vperm.xlu1 %3404, %v554_v15  }
  0x7c   :  { %563 = vperm.xlu0 %3403, %v555_v17  }
  0x7d   :  { %120 = vsyncpa [#allocation5], 0  ;;  %v333_v19 = vld [vmem:[%s3608_s13] sm:$0xf]  ;;  %vm350_vm3 = vcmask 261120   ;;  %v396_v20 = vlaneseq  ;;  %vm421_vm6 = vcmask 130048  }
  0x7e   :  { %3064 = vmatmul.mubr.msk.bf16.vlgmr.msra.gmra.mrb[4].mxu1 %vm350_vm3, %v333_v19  ;;  %v651_v46 = vld [vmem:[%s3713_s19] sm:$0xf]  ;;  %v3409_v59 = vld [vmem:[%s3603_s9 + $0x8] ss:$0 sps:$4 sm:$0xff]   ;;  %s3583_s0 = smov 96   ;;  %v3414_v18 = vld [vmem:[%s3733_s24 + $0x10] sm:$0xff]  }
  0x7f   :  { %v3912_v21 = vand.u32 127, %v396_v20  ;;  %v3408_v55 = vld [vmem:[%s3603_s9] sm:$0xff]   ;;  %v667_v57 = vsel %vm240_vm0, %v651_v46, 0  ;;  %v3411_v3 = vld [vmem:[%s3723_s12 + $0x8] sm:$0xff]   ;;  %s4344_s5 = sld [smem:[#allocation21_spill]]  ;;  %s4345_s9 = sld [smem:[#allocation9_spill]] }
  0x80   :  { %v3410_v2 = vld [vmem:[%s3723_s12] sm:$0xff]   ;;  %v3413_v13 = vld [vmem:[%s3733_s24 + $0x8] sm:$0xff]   ;;  %s3584_s13 = smov 64   ;;  %s4346_s17 = sld [smem:[#allocation8_spill]] }
  0x81   :  { %v3412_v12 = vld [vmem:[%s3733_s24] sm:$0xff]   ;;  %s4347_s21 = sld [smem:[#allocation23_spill]]  ;;  %s4348_s25 = sld [smem:[#allocation22_spill]] }
  0x82   :  { %s4349_s29 = sld [smem:[#allocation25_spill]]  ;;  %s4351_s19 = sld [smem:[#allocation26_spill]] }
  0x83   :  { %s4353_s30 = sld [smem:[#allocation12_spill]]  ;;  %s4354_s12 = sld [smem:[#allocation14_spill]] }
  0x84   :  { %s4356_s27 = sld [smem:[#allocation19_spill]]  ;;  %s4357_s4 = sld [smem:[#allocation20_spill]] }
  0x85   :  { %s3585_s28 = smov 32   ;;  %s4358_s1 = sld [smem:[#allocation11_spill]] }
  0x86   :  { %s4359_s2 = sld [smem:[#allocation32_spill]]  ;;  %s4360_s7 = sld [smem:[#allocation30_spill]] }
  0x87   :  { %s4361_s10 = sld [smem:[#allocation28_spill]]  ;;  %s4362_s11 = sld [smem:[#allocation29_spill]] }
  0x88   :  { %s4363_s15 = sld [smem:[#allocation13_spill]]  ;;  %s4364_s16 = sld [smem:[#allocation34_spill]] }
  0x89   :  { %s4365_s18 = sld [smem:[#allocation36_spill]]  ;;  %s4366_s22 = sld [smem:[#allocation33_spill]] }
  0x8a   :  { %s4367_s23 = sld [smem:[#allocation37_spill]]  ;;  %s4368_s26 = sld [smem:[#allocation31_spill]] }
  0xeb   :  { %v481_v22 = vpop.permute.xlu0 %480 }
  0xec   :  { %vm488_vm4 = vcmp.eq.s32.totalorder %v3912_v21, %v481_v22 }
  0xed   :  { %v487_v23 = vpop.permute.xlu1 %486  ;;  %v2798_v24 = vsel %vm488_vm4, 1.0, %v3580_v1  ;;  %vm991_vm4 = vcmask 195584  }
  0xee   :  { %vm490_vm9 = vcmp.eq.s32.totalorder %v3912_v21, %v487_v23 }
  0xef   :  { %v484_v25 = vpop.permute.xlu0 %483  ;;  %v2800_v38 = vsel %vm490_vm9, 1.0, %v3580_v1 }
  0xf0   :  { %vm489_vm5 = vcmp.eq.s32.totalorder %v3912_v21, %v484_v25  ;;  %v498_v48 = vpack.c.bf16 %v2800_v38, %v2800_v38  ;;  %v3415_v25 = vld [vmem:[%s3733_s24 + $0x18] sm:$0xff]  }
  0xf1   :  { %v2799_v26 = vsel %vm489_vm5, 1.0, %v3580_v1  ;;  %v403_v27 = vpop.permute.xlu1 %402 }
  0xf2   :  { %v497_v28 = vpack.c.bf16 %v2799_v26, %v2798_v24  ;;  %vm410_vm7 = vcmp.eq.s32.totalorder %v3912_v21, %v403_v27  ;;  %v3416_v26 = vld [vmem:[%s3733_s24 + $0x20] sm:$0xff]   ;;  %v3417_v27 = vld [vmem:[%s3733_s24 + $0x28] sm:$0xff]  }
  0xf3   :  { %v406_v29 = vpop.permute.xlu0 %405  ;;  %v2793_v30 = vsel %vm410_vm7, 1.0, %v3580_v1 }
  0xf4   :  { %vm411_vm8 = vcmp.eq.s32.totalorder %v3912_v21, %v406_v29  ;;  %3075 = vmatprep.mubr.msk.bf16.mxu0 %vm421_vm6, %v497_v28 }
  0xf5   :  { %v2794_v31 = vsel %vm411_vm8, 1.0, %v3580_v1  ;;  %v409_v33 = vpop.permute.xlu1 %408 }
  0xf6   :  { %v419_v32 = vpack.c.bf16 %v2794_v31, %v2793_v30  ;;  %vm412_vm10 = vcmp.eq.s32.totalorder %v3912_v21, %v409_v33  ;;  %v2812_v33 = vld [vmem:[%s3718_s20] ss:$0 sm:$0xff]  ;;  %s4355_s20 = sld [smem:[#allocation27_spill]] }
  0xf7   :  { %v558_v35 = vpop.permute.xlu0 %557  ;;  %v2795_v39 = vsel %vm412_vm10, 1.0, %v3580_v1 }
  0xf8   :  { %3069 = vmatprep.mubr.msk.bf16.mxu1 %vm421_vm6, %v419_v32  ;;  %vm565_vm11 = vcmp.eq.s32.totalorder %v3912_v21, %v558_v35  ;;  %v420_v50 = vpack.c.bf16 %v2795_v39, %v2795_v39 }
  0xf9   :  { %v561_v34 = vpop.permute.xlu1 %560  ;;  %v2803_v49 = vsel %vm565_vm11, 1.0, %v3580_v1 }
  0xfa   :  { %vm566_vm12 = vcmp.eq.s32.totalorder %v3912_v21, %v561_v34 }
  0xfb   :  { %v2804_v51 = vsel %vm566_vm12, 1.0, %v3580_v1  ;;  %v564_v53 = vpop.permute.xlu0 %563 }
  0xfc   :  { %v574_v56 = vpack.c.bf16 %v2804_v51, %v2803_v49  ;;  %vm567_vm13 = vcmp.eq.s32.totalorder %v3912_v21, %v564_v53  ;;  %v3419_v53 = vld [vmem:[%s3733_s24 + $0x38] sm:$0xff]  }
  0xfd   :  { %v2805_v58 = vsel %vm567_vm13, 1.0, %v3580_v1 }
  0xfe   :  { %v575_v60 = vpack.c.bf16 %v2805_v58, %v2805_v58 }
 0x140   :  { %v3926_v36 = vpop.f32.mrb[0].mxu0 }
 0x141   :  { %v3051_v37 = vpop.f32.mrb[1].mxu0 }
 0x142   :  { %v3932_v40 = vpop.f32.mrb[2].mxu0  ;;  %v3934_v41 = vpop.f32.mrb[0].mxu1 }
 0x143   :  { %v394_v42 = vpack.c.bf16 %v3932_v40, %v3926_v36  ;;  %v3052_v43 = vpop.f32.mrb[3].mxu0  ;;  %v395_v44 = vpack.c.bf16 %v3934_v41, %v3934_v41  ;;  %v3057_v45 = vpop.f32.mrb[1].mxu1 }
 0x144   :  { %v330_v47 = vpop.f32.mrb[2].mxu1 }
 0x145   :  { %3067 = vmatprep.subr.bf16.mxu1 %v394_v42  ;;  %3073 = vmatprep.subr.bf16.mxu0 %v394_v42  ;;  %v3058_v52 = vpop.f32.mrb[3].mxu1  ;;  %v3945_v54 = vsel %vm240_vm0, %v395_v44, 0 }
 0x146   :  { %3068 = vmatpush3.bf16.msra.mxu1 %v394_v42  ;;  %3074 = vmatpush3.bf16.msra.mxu0 %v394_v42  ;;  %v3418_v52 = vld [vmem:[%s3733_s24 + $0x30] sm:$0xff]   ;;  %s4352_s24 = sld [smem:[#allocation10_spill]] }
 0x147   :  { %3335 = vmatprep.subr.msk.bf16.mxu1 %vm240_vm0, %v395_v44  ;;  %3336 = vmatprep.subr.msk.bf16.mxu0 %vm240_vm0, %v651_v46 }
 0x149   :  { %3070 = vmatmul.mubr.msk.bf16.vlgmr.msra.gmra.mrb[8].mxu1 %vm421_vm6, %v420_v50  ;;  %3076 = vmatmul.mubr.msk.bf16.vlgmr.msra.gmra.mrb[4].mxu0 %vm421_vm6, %v498_v48 }
 0x14a   :  { %3081 = vmatprep.mubr.msk.bf16.mxu1 %vm236_vm2, %v574_v56  ;;  %3080 = vmatpush3.bf16.msra.mxu1 %v3945_v54 }
 0x14b   :  { %3086 = vmatpush3.bf16.msra.mxu0 %v667_v57  ;;  %3087 = vmatprep.mubr.msk.bf16.mxu0 %vm236_vm2, %v3408_v55  ;;  %v2813_v55 = vld [vmem:[%s4344_s5] ss:$0 sm:$0xff]  ;;  %s4369_s5 = sld [smem:[#allocation15_spill]] }
 0x14c   :  { %3091 = vmatprep.subr.bf16.mxu1 %v3410_v2  ;;  %3099 = vmatprep.subr.bf16.mxu0 %v3412_v12 }
 0x151   :  { %3082 = vmatmul.mubr.msk.bf16.vlgmr.msra.gmra.mrb[12].mxu1 %vm236_vm2, %v575_v60  ;;  %3088 = vmatmul.mubr.msk.bf16.vlgmr.msra.gmra.mrb[8].mxu0 %vm236_vm2, %v3409_v59  ;;  %v3960_v61 = vpop.f32.mrb[4].mxu1 }
 0x152   :  { %v3065_v62 = vpop.f32.mrb[5].mxu1  ;;  %3092 = vmatpush3.bf16.msra.mxu1 %v3410_v2  ;;  %3100 = vmatpush3.bf16.msra.mxu0 %v3412_v12 }
 0x153   :  { %v391_v63 = vpop.f32.mrb[6].mxu1  ;;  %3093 = vmatprep.subr.bf16.mxu1 %v3411_v3  ;;  %3101 = vmatprep.subr.bf16.mxu0 %v3413_v13 }
 0x154   :  { %v3066_v0 = vpop.f32.mrb[7].mxu1 }
 0x156   :  { %3094 = vmatpush3.bf16.msra.mxu1 %v3411_v3  ;;  %3102 = vmatpush3.bf16.msra.mxu0 %v3413_v13 }
 0x157   :  { %3119 = vmatprep.subr.bf16.mxu1 %v3580_v1  ;;  %3103 = vmatprep.subr.bf16.mxu0 %v3414_v18 }
 0x15a   :  { %3104 = vmatpush3.bf16.msra.mxu0 %v3414_v18  ;;  %v1109_v18 = vld [vmem:[%s4345_s9] sm:$0xff] }
 0x15b   :  { %3105 = vmatprep.subr.bf16.mxu0 %v3415_v25 }
 0x15e   :  { %3106 = vmatpush3.bf16.msra.mxu0 %v3415_v25 }
 0x15f   :  { %3107 = vmatprep.subr.bf16.mxu0 %v3416_v26 }
 0x162   :  { %3108 = vmatpush3.bf16.msra.mxu0 %v3416_v26 }
 0x163   :  { %3109 = vmatprep.subr.bf16.mxu0 %v3417_v27 }
 0x166   :  { %3110 = vmatpush3.bf16.msra.mxu0 %v3417_v27  ;;  %v3420_v27 = vld [vmem:[%s4347_s21] sm:$0xff]  }
 0x167   :  { %3111 = vmatprep.subr.bf16.mxu0 %v3418_v52 }
 0x16a   :  { %3112 = vmatpush3.bf16.msra.mxu0 %v3418_v52 }
 0x16b   :  { %3113 = vmatprep.subr.bf16.mxu0 %v3419_v53 }
 0x16e   :  { %3114 = vmatpush3.bf16.msra.mxu0 %v3419_v53  ;;  %v1359_v53 = vpack.c.bf16 %v3960_v61, %v3960_v61 }
 0x16f   :  { %3149 = vmatprep.subr.bf16.mxu0 %v3580_v1 }
 0x21c   :  { %v3964_v4 = vpop.f32.mrb[8].mxu1  ;;  %v3077_v5 = vpop.f32.mrb[4].mxu0 }
 0x21d   :  { %v3966_v6 = vpop.f32.mrb[9].mxu1  ;;  %v539_v7 = vpop.f32.mrb[5].mxu0 }
 0x21e   :  { %v3072_v8 = vpop.f32.mrb[10].mxu1  ;;  %636 = vrot.lane.b32.xlu1 %v539_v7, %s3583_s0  ;;  %v3078_v9 = vpop.f32.mrb[6].mxu0 }
 0x21f   :  { %v3969_v10 = vpop.f32.mrb[11].mxu1  ;;  %v542_v11 = vpop.f32.mrb[7].mxu0 }
 0x220   :  { %638 = vrot.lane.b32.xlu0 %v542_v11, %s3583_s0 }
 0x222   :  { %640 = vrot.lane.b32.xlu1 %v3077_v5, %s3583_s0 }
 0x224   :  { %v3083_v14 = vpop.f32.mrb[12].mxu1  ;;  %v3089_v15 = vpop.f32.mrb[8].mxu0 }
 0x225   :  { %v619_v16 = vpop.f32.mrb[13].mxu1  ;;  %v703_v17 = vpop.f32.mrb[9].mxu0 }
 0x226   :  { %v3084_v19 = vpop.f32.mrb[14].mxu1  ;;  %v3090_v22 = vpop.f32.mrb[10].mxu0 }
 0x227   :  { %v622_v23 = vpop.f32.mrb[15].mxu1  ;;  %v706_v24 = vpop.f32.mrb[11].mxu0  ;;  %v1110_v19 = vld [vmem:[%s4345_s9 + $0x8] sm:$0xff]  ;;  %v4014_v22 = vshrl.u32 %v396_v20, 7  ;;  %s4370_s9 = sld [smem:[#allocation18_spill]] }
 0x290   :  { %v637_v28 = vpop.permute.xlu1 %636 }
 0x291   :  { %v645_v29 = vadd.f32 %v637_v28, %v3966_v6  ;;  %v3421_v28 = vld [vmem:[%s4347_s21 + $0x8] sm:$0xff]   ;;  %s4372_s21 = sld [smem:[#allocation39_spill]] }
 0x292   :  { %v639_v30 = vpop.permute.xlu0 %638 }
 0x293   :  { %v717_v31 = vadd.f32 %v703_v17, %v645_v29  ;;  %v646_v32 = vadd.f32 %v639_v30, %v3969_v10  ;;  %v2829_v29 = vld [vmem:[%s4348_s25] ss:$0 sm:$0xff]  ;;  %s4373_s25 = sld [smem:[#allocation38_spill]] }
 0x294   :  { %v641_v34 = vpop.permute.xlu1 %640 }
 0x295   :  { %v720_v35 = vadd.f32 %v717_v31, %v619_v16  ;;  %v718_v37 = vadd.f32 %v706_v24, %v646_v32  ;;  %v647_v38 = vadd.f32 %v3964_v4, %v641_v34 }
 0x297   :  { %v730_v39 = vadd.f32 %v2812_v33, %v720_v35  ;;  %v721_v42 = vadd.f32 %v718_v37, %v622_v23  ;;  %v719_v43 = vadd.f32 %v3089_v15, %v647_v38  ;;  %v2826_v23 = vld [vmem:[%s4346_s17] ss:$0 sm:$0xff]  ;;  %s4371_s17 = sld [smem:[#allocation35_spill]] }
 0x298   :  { %vm968_vm14 = vcmp.eq.s32.totalorder %v4014_v22, %v2826_v23 }
 0x299   :  { %v731_v44 = vadd.f32 %v2812_v33, %v721_v42  ;;  %v722_v45 = vadd.f32 %v3083_v14, %v719_v43  ;;  %v733_v46 = vmax.f32 %v730_v39, 0.0 }
 0x29b   :  { %v734_v47 = vmax.f32 %v731_v44, 0.0  ;;  %v732_v48 = vadd.f32 %v2812_v33, %v722_v45 }
 0x29d   :  { %v736_v49 = vpack.c.bf16 %v734_v47, %v733_v46  ;;  %v735_v50 = vmax.f32 %v732_v48, 0.0  ;;  %v3422_v46 = vld [vmem:[%s4349_s29] sm:$0xff]   ;;  %v3423_v48 = vld [vmem:[%s4349_s29 + $0x8] sm:$0xff]   ;;  %s4375_s29 = sld [smem:[#allocation41_spill]] }
 0x29f   :  { %v737_v51 = vpack.c.bf16 %v735_v50, %v735_v50  ;;  %3095 = vmatprep.mubr.msk.bf16.mxu1 %vm350_vm3, %v736_v49 }
 0x2a1   :  { %3096 = vmatmul.mubr.msk.bf16.vlgmr.msra.gmra.mrb[16].mxu1 %vm350_vm3, %v737_v51 }
 0x2a2   :  { %3123 = vmatprep.mubr.msk.bf16.mxu1 %vm3581_vm1, %v3580_v1 }
 0x374   :  { %v3097_v56 = vpop.f32.mrb[16].mxu1 }
 0x375   :  { %v810_v57 = vadd.f32 %v3097_v56, %v2813_v55  ;;  %v801_v58 = vpop.f32.mrb[17].mxu1 }
 0x376   :  { %v802_v59 = vadd.f32 %v2813_v55, %v801_v58  ;;  %v3098_v60 = vpop.f32.mrb[18].mxu1 }
 0x377   :  { %833 = vst [vmem:[%s3863_s3 + $0x10] sm:$0xff] %v810_v57  ;;  %v804_v62 = vpop.f32.mrb[19].mxu1  ;;  %v3997_v2 = vpack.c.bf16 %v810_v57, %v810_v57 }
 0x378   :  { %831 = vst [vmem:[%s3863_s3] sm:$0xff] %v802_v59  ;;  %v805_v63 = vadd.f32 %v2813_v55, %v804_v62 }
 0x37a   :  { %832 = vst [vmem:[%s3863_s3 + $0x8] sm:$0xff] %v805_v63  ;;  %v3995_v0 = vpack.c.bf16 %v805_v63, %v802_v59  ;;  %s4350_s3 = sld [smem:[#allocation24_spill]]  ;;  %v1364_v59 = vsel %vm240_vm0, %v1359_v53, 0  ;;  %v3429_v53 = vld [vmem:[%s4359_s2 + $0x18] sm:$0xff]  }
 0x37c   :  { %3115 = vmatprep.mubr.bf16.mxu0 %v3995_v0 }
 0x37d   :  { %3116 = vmatmul.mubr.bf16.vlgmr.msra.gmra.mrb[12].mxu0 %v3997_v2 }
 0x37e   :  { %3153 = vmatprep.mubr.msk.bf16.mxu0 %vm3581_vm1, %v3580_v1 }
 0x380   :  { %v2831_v49 = vld [vmem:[%s4350_s3] ss:$0 sm:$0xff]  ;;  %s4376_s3 = sld [smem:[#allocation40_spill]] }
 0x450   :  { %v3117_v3 = vpop.f32.mrb[12].mxu0 }
 0x451   :  { %v934_v5 = vpop.f32.mrb[13].mxu0 }
 0x452   :  { %951 = vrot.lane.b32.xlu0 %v934_v5, %s3584_s13  ;;  %v3118_v7 = vpop.f32.mrb[14].mxu0 }
 0x453   :  { %v937_v8 = vpop.f32.mrb[15].mxu0 }
 0x454   :  { %953 = vrot.lane.b32.xlu1 %v937_v8, %s3584_s13 }
 0x456   :  { %955 = vrot.lane.b32.xlu0 %v3117_v3, %s3584_s13 }
 0x4c4   :  { %v952_v9 = vpop.permute.xlu0 %951 }
 0x4c5   :  { %v960_v12 = vadd.f32 %v952_v9, %v3966_v6  ;;  %v817_v6 = vadd.s32 8, %v4014_v22  ;;  %v2841_v9 = vld [vmem:[%s4351_s19] ss:$0 sm:$0xff]  ;;  %s4377_s19 = sld [smem:[#allocation17_spill]] }
 0x4c6   :  { %v954_v11 = vpop.permute.xlu1 %953 }
 0x4c7   :  { %v961_v13 = vadd.f32 %v954_v11, %v3969_v10  ;;  %vm969_vm15 = vcmp.eq.s32.totalorder %v817_v6, %v2826_v23  ;;  %v2827_v10 = vsel %vm968_vm14, 1.0, %v3580_v1 }
 0x4c8   :  { %v956_v14 = vpop.permute.xlu0 %955  ;;  %v2828_v24 = vsel %vm969_vm15, 1.0, %v3580_v1 }
 0x4c9   :  { %v975_v15 = vpack.c.bf16 %v961_v13, %v960_v12  ;;  %v962_v16 = vadd.f32 %v3964_v4, %v956_v14  ;;  %v974_v26 = vpack.c.bf16 %v2828_v24, %v2827_v10  ;;  %v1345_v12 = vld [vmem:[%s4352_s24 + $0x8] sm:$0xff]  ;;  %v1344_v13 = vld [vmem:[%s4352_s24] sm:$0xff]  ;;  %s4378_s24 = sld [smem:[#allocation42_spill]] }
 0x4ca   :  { %v1640_v14 = vld [vmem:[%s4353_s30] sm:$0xff] }
 0x4cb   :  { %v976_v17 = vpack.c.bf16 %v962_v16, %v962_v16  ;;  %986 = vrot.lane.b32.xlu1 %v975_v15, %s3584_s13  ;;  %v1828_v15 = vld [vmem:[%s4354_s12] sm:$0xff]  ;;  %s4380_s12 = sld [smem:[#allocation44_spill]] }
 0x4cc   :  { %v3424_v16 = vld [vmem:[%s4355_s20] sm:$0xff]  }
 0x4cd   :  { %988 = vrot.lane.b32.xlu0 %v976_v17, %s3584_s13  ;;  %3150 = vmatpush3.bf16.msra.mxu0 %v3424_v16  ;;  %v3425_v17 = vld [vmem:[%s4355_s20 + $0x8] sm:$0xff]   ;;  %s4381_s20 = sld [smem:[#allocation45_spill]] }
 0x4ce   :  { %3151 = vmatprep.subr.bf16.mxu0 %v3580_v1 }
 0x4cf   :  { %1112 = vperm.xlu1 %3404, %v1109_v18  }
 0x4d1   :  { %1115 = vperm.xlu0 %3403, %v1110_v19   ;;  %3152 = vmatpush3.bf16.msra.mxu0 %v3425_v17 }
 0x4d2   :  { %3163 = vmatprep.subr.bf16.mxu0 %v3580_v1 }
 0x53d   :  { %v987_v4 = vpop.permute.xlu1 %986 }
 0x53e   :  { %3120 = vmatpush3.bf16.msra.mxu1 %v987_v4 }
 0x53f   :  { %v989_v25 = vpop.permute.xlu0 %988  ;;  %3121 = vmatprep.subr.bf16.mxu1 %v3580_v1 }
 0x540   :  { %v996_v20 = vsel %vm240_vm0, %v989_v25, 0 }
 0x542   :  { %3122 = vmatpush3.bf16.msra.mxu1 %v996_v20 }
 0x543   :  { %3127 = vmatprep.subr.bf16.mxu1 %v3580_v1 }
 0x545   :  { %3124 = vmatmul.mubr.msk.bf16.vlgmr.msra.gmra.mrb[20].mxu1 %vm991_vm4, %v974_v26 }
 0x546   :  { %3131 = vmatprep.mubr.msk.bf16.mxu1 %vm3581_vm1, %v3580_v1  ;;  %3128 = vmatpush3.bf16.msra.mxu1 %v3420_v27 }
 0x547   :  { %3129 = vmatprep.subr.bf16.mxu1 %v3580_v1 }
 0x54a   :  { %3130 = vmatpush3.bf16.msra.mxu1 %v3421_v28 }
 0x54b   :  { %3135 = vmatprep.subr.bf16.mxu1 %v3580_v1 }
 0x54e   :  { %v1113_v43 = vpop.permute.xlu1 %1112 }
 0x54f   :  { %vm1117_vm7 = vcmp.eq.s32.totalorder %v3912_v21, %v1113_v43 }
 0x550   :  { %v1116_v39 = vpop.permute.xlu0 %1115  ;;  %v2835_v45 = vsel %vm1117_vm7, 1.0, %v3580_v1 }
 0x551   :  { %vm1118_vm5 = vcmp.eq.s32.totalorder %v3912_v21, %v1116_v39 }
 0x552   :  { %v2836_v44 = vsel %vm1118_vm5, 1.0, %v3580_v1 }
 0x553   :  { %v1123_v47 = vpack.c.bf16 %v2836_v44, %v2835_v45 }
 0x618   :  { %v1032_v30 = vpop.f32.mrb[20].mxu1 }
 0x619   :  { %v1033_v31 = vadd.f32 %v2829_v29, %v1032_v30  ;;  %v3125_v32 = vpop.f32.mrb[21].mxu1  ;;  %v2093_v30 = vld [vmem:[%s4356_s27] sm:$0xff] }
 0x61a   :  { %v1035_v33 = vpop.f32.mrb[22].mxu1  ;;  %3470 = vrcp.f32 %v2093_v30  ;;  %v1641_v32 = vld [vmem:[%s4353_s30 + $0x8] sm:$0xff]  ;;  %s4379_s30 = sld [smem:[#allocation43_spill]] }
 0x61b   :  { %v1036_v34 = vadd.f32 %v2829_v29, %v1035_v33  ;;  %v3126_v35 = vpop.f32.mrb[23].mxu1  ;;  %v1039_v37 = vmax.f32 %v1033_v31, 0.0 }
 0x61d   :  { %v1040_v38 = vmax.f32 %v1036_v34, 0.0 }
 0x61f   :  { %v1041_v42 = vpack.c.bf16 %v1040_v38, %v1039_v37 }
 0x621   :  { %3132 = vmatmul.mubr.msk.bf16.vlgmr.msra.gmra.mrb[24].mxu1 %vm350_vm3, %v1041_v42 }
 0x622   :  { %3136 = vmatpush3.bf16.msra.mxu1 %v3945_v54  ;;  %3137 = vmatprep.mubr.msk.bf16.mxu1 %vm3581_vm1, %v3580_v1 }
 0x623   :  { %3141 = vmatprep.subr.bf16.mxu1 %v3580_v1 }
 0x624   :  { %v3471_v34 = vpop.eup %3470 }
 0x629   :  { %3138 = vmatmul.mubr.msk.bf16.vlgmr.msra.gmra.mrb[28].mxu1 %vm236_vm2, %v1123_v47 }
 0x62a   :  { %3142 = vmatpush3.bf16.msra.mxu1 %v3422_v46  ;;  %3145 = vmatprep.mubr.msk.bf16.mxu1 %vm3581_vm1, %v3580_v1 }
 0x62b   :  { %3143 = vmatprep.subr.bf16.mxu1 %v3580_v1 }
 0x62e   :  { %3144 = vmatpush3.bf16.msra.mxu1 %v3423_v48 }
 0x62f   :  { %3157 = vmatprep.subr.bf16.mxu1 %v3580_v1 }
 0x6f4   :  { %v1102_v50 = vpop.f32.mrb[24].mxu1 }
 0x6f5   :  { %v3133_v51 = vpop.f32.mrb[25].mxu1  ;;  %v1103_v55 = vadd.f32 %v2831_v49, %v1102_v50  ;;  %v3426_v50 = vld [vmem:[%s4359_s2] sm:$0xff]  }
 0x6f6   :  { %v1105_v52 = vpop.f32.mrb[26].mxu1  ;;  %v3427_v51 = vld [vmem:[%s4359_s2 + $0x8] sm:$0xff]  }
 0x6f7   :  { %v1106_v56 = vadd.f32 %v2831_v49, %v1105_v52  ;;  %v3134_v57 = vpop.f32.mrb[27].mxu1  ;;  %v3428_v52 = vld [vmem:[%s4359_s2 + $0x10] sm:$0xff]  }
 0x6f8   :  { %v3432_v57 = vld [vmem:[%s4359_s2 + $0x30] sm:$0xff]  }
 0x6f9   :  { %v1168_v58 = vpack.c.bf16 %v1106_v56, %v1103_v55  ;;  %v3430_v55 = vld [vmem:[%s4359_s2 + $0x20] sm:$0xff]   ;;  %v3431_v56 = vld [vmem:[%s4359_s2 + $0x28] sm:$0xff]  }
 0x6fb   :  { %3146 = vmatmul.mubr.msk.bf16.vlgmr.msra.gmra.mrb[32].mxu1 %vm350_vm3, %v1168_v58  ;;  %v3433_v58 = vld [vmem:[%s4359_s2 + $0x38] sm:$0xff]  }
 0x6fc   :  { %3158 = vmatpush3.bf16.msra.mxu1 %v1364_v59  ;;  %v1161_v60 = vpop.f32.mrb[28].mxu1  ;;  %3159 = vmatprep.mubr.msk.bf16.mxu1 %vm3581_vm1, %v3580_v1  ;;  %v3434_v59 = vld [vmem:[%s4360_s7] sm:$0xff]  }
 0x6fd   :  { %1241 = vrot.lane.b32.xlu1 %v1161_v60, %s3584_s13  ;;  %v3139_v62 = vpop.f32.mrb[29].mxu1  ;;  %3169 = vmatprep.subr.bf16.mxu1 %v3580_v1  ;;  %v3435_v60 = vld [vmem:[%s4360_s7 + $0x8] sm:$0xff]  }
 0x6fe   :  { %v1164_v63 = vpop.f32.mrb[30].mxu1  ;;  %v2842_v62 = vld [vmem:[%s4361_s10] ss:$0 sm:$0xff] }
 0x6ff   :  { %v3140_v3 = vpop.f32.mrb[31].mxu1 }
 0x76f   :  { %v1242_v18 = vpop.permute.xlu1 %1241 }
 0x7ce   :  { %v1222_v5 = vpop.f32.mrb[32].mxu1 }
 0x7cf   :  { %1231 = vrot.lane.b32.xlu1 %v1222_v5, %s3583_s0  ;;  %v3147_v7 = vpop.f32.mrb[33].mxu1 }
 0x7d0   :  { %v1225_v8 = vpop.f32.mrb[34].mxu1 }
 0x7d1   :  { %1233 = vrot.lane.b32.xlu0 %v1225_v8, %s3583_s0  ;;  %v3148_v11 = vpop.f32.mrb[35].mxu1 }
 0x7d3   :  { %1255 = vrot.lane.b32.xlu1 %v2841_v9, %s3583_s0 }
 0x7d5   :  { %1243 = vrot.lane.b32.xlu0 %v1164_v63, %s3584_s13 }
 0x7d7   :  { %1350 = vperm.xlu1 %3404, %v1345_v12   ;;  %v2851_v12 = vld [vmem:[%s4362_s11] ss:$0 sm:$0xff] }
 0x7d9   :  { %1347 = vperm.xlu0 %3403, %v1344_v13  }
 0x7db   :  { %1643 = vperm.xlu1 %3404, %v1640_v14  }
 0x7df   :  { %1830 = vperm.xlu1 %3404, %v1828_v15  }
 0x841   :  { %v1232_v19 = vpop.permute.xlu1 %1231 }
 0x842   :  { %v1237_v6 = vadd.f32 %v1232_v19, %v3926_v36  ;;  %v2095_v36 = vld [vmem:[%s4357_s4] sm:$0xff]  ;;  %s3587_s4 = smov [#allocation4]  }
 0x843   :  { %v1234_v23 = vpop.permute.xlu0 %1233  ;;  %3472 = vrcp.f32 %v2095_v36 }
 0x844   :  { %v1247_v4 = vadd.f32 %v1242_v18, %v1237_v6  ;;  %v1238_v24 = vadd.f32 %v1234_v23, %v3932_v40 }
 0x845   :  { %v1256_v10 = vpop.permute.xlu1 %1255 }
 0x846   :  { %v1258_v20 = vadd.f32 %v1256_v10, %v1247_v4 }
 0x847   :  { %v1244_v25 = vpop.permute.xlu0 %1243 }
 0x848   :  { %v1248_v26 = vadd.f32 %v1244_v25, %v1238_v24  ;;  %v1260_v28 = vmax.f32 %v1258_v20, 0.0 }
 0x84a   :  { %v1259_v27 = vadd.f32 %v1256_v10, %v1248_v26 }
 0x84c   :  { %v1261_v29 = vmax.f32 %v1259_v27, 0.0 }
 0x84d   :  { %v3473_v39 = vpop.eup %3472 }
 0x84e   :  { %v1262_v31 = vpack.c.bf16 %v1261_v29, %v1260_v28 }
 0x850   :  { %1275 = vrot.lane.b32.xlu0 %v1262_v31, %s3585_s28 }
 0x854   :  { %1646 = vperm.xlu0 %3403, %v1641_v32   ;;  %v2868_v32 = vld [vmem:[%s4363_s15] ss:$0 sm:$0xff] }
 0x855   :  { %vm1705_vm13 = vcmp.eq.s32.totalorder %v4014_v22, %v2868_v32 }
 0x856   :  { %v1351_v33 = vpop.permute.xlu1 %1350 }
 0x857   :  { %vm1353_vm8 = vcmp.eq.s32.totalorder %v3912_v21, %v1351_v33 }
 0x858   :  { %1897 = vrot.lane.b32.xlu0 %v3960_v61, %s3583_s0  ;;  %v1348_v40 = vpop.permute.xlu0 %1347  ;;  %v2847_v35 = vsel %vm1353_vm8, 1.0, %v3580_v1  ;;  %v2849_v61 = vld [vmem:[%s4358_s1] ss:$0 sm:$0xff]  ;;  %s2713_s1 = sshll.u32 %s3587_s4, 4  ;;  %s2714_s1 = int_to_ptr.vmem [resolvable:$true] %s2713_s1 }
 0x859   :  { %vm1352_vm9 = vcmp.eq.s32.totalorder %v3912_v21, %v1348_v40  ;;  %vm1412_vm10 = vcmp.eq.s32.totalorder %v4014_v22, %v2849_v61  ;;  %v3437_v61 = vld [vmem:[%s4364_s16 + $0x8] sm:$0xff]  }
 0x85a   :  { %v2846_v37 = vsel %vm1352_vm9, 1.0, %v3580_v1  ;;  %v2850_v45 = vsel %vm1412_vm10, 1.0, %v3580_v1  ;;  %v1644_v23 = vpop.permute.xlu1 %1643 }
 0x85b   :  { %v1358_v38 = vpack.c.bf16 %v2847_v35, %v2846_v37  ;;  %v1415_v49 = vpack.c.bf16 %v2850_v45, %v2850_v45  ;;  %vm1648_vm12 = vcmp.eq.s32.totalorder %v3912_v21, %v1644_v23 }
 0x85c   :  { %2212 = vperm.xlu0 %3403, %v3471_v34   ;;  %v2865_v27 = vsel %vm1648_vm12, 1.0, %v3580_v1  ;;  %v2869_v34 = vsel %vm1705_vm13, 1.0, %v3580_v1 }
 0x85d   :  { %3160 = vmatmul.mubr.msk.bf16.vlgmr.msra.gmra.mrb[36].mxu1 %vm236_vm2, %v1358_v38 }
 0x85e   :  { %3173 = vmatprep.mubr.msk.bf16.mxu1 %vm3581_vm1, %v3580_v1  ;;  %3170 = vmatpush3.bf16.msra.mxu1 %v3434_v59 }
 0x85f   :  { %3171 = vmatprep.subr.bf16.mxu1 %v3580_v1 }
 0x860   :  { %2273 = vperm.xlu0 %3403, %v3473_v39   ;;  %v1708_v39 = vpack.c.bf16 %v2869_v34, %v2869_v34  ;;  %v2884_v34 = vld [vmem:[%s4373_s25] ss:$0 sm:$0xff] }
 0x862   :  { %3172 = vmatpush3.bf16.msra.mxu1 %v3435_v60 }
 0x863   :  { %3197 = vmatprep.subr.bf16.mxu1 %v3580_v1 }
 0x8c2   :  { %v1276_v42 = vpop.permute.xlu0 %1275 }
 0x8c3   :  { %3154 = vmatmul.mubr.msk.bf16.vlgmr.msra.gmra.mrb[16].mxu0 %vm350_vm3, %v1276_v42  ;;  %v3436_v42 = vld [vmem:[%s4364_s16] sm:$0xff]  }
 0x8c4   :  { %3165 = vmatprep.mubr.msk.bf16.mxu0 %vm3581_vm1, %v3580_v1 }
 0x8d3   :  { %v1647_v6 = vpop.permute.xlu0 %1646 }
 0x8d4   :  { %vm1649_vm11 = vcmp.eq.s32.totalorder %v3912_v21, %v1647_v6 }
 0x8d5   :  { %v2866_v25 = vsel %vm1649_vm11, 1.0, %v3580_v1 }
 0x8d6   :  { %v1654_v28 = vpack.c.bf16 %v2866_v25, %v2865_v27  ;;  %v3443_v27 = vld [vmem:[%s4372_s21 + $0x8] sm:$0xff]  }
 0x930   :  { %v1400_v43 = vpop.f32.mrb[36].mxu1 }
 0x931   :  { %v3161_v44 = vpop.f32.mrb[37].mxu1 }
 0x932   :  { %v1403_v46 = vpop.f32.mrb[38].mxu1  ;;  %v2870_v44 = vld [vmem:[%s4366_s22] ss:$0 sm:$0xff] }
 0x933   :  { %v1416_v47 = vpack.c.bf16 %v1403_v46, %v1400_v43  ;;  %v3162_v48 = vpop.f32.mrb[39].mxu1  ;;  %v3440_v43 = vld [vmem:[%s4365_s18] sm:$0xff]  }
 0x935   :  { %3164 = vmatpush3.bf16.msra.mxu0 %v1416_v47 }
 0x936   :  { %3177 = vmatprep.subr.bf16.mxu0 %v3580_v1 }
 0x938   :  { %3166 = vmatmul.mubr.msk.bf16.vlgmr.msra.gmra.mrb[20].mxu0 %vm421_vm6, %v1415_v49 }
 0x939   :  { %3178 = vmatpush3.bf16.msra.mxu0 %v3426_v50  ;;  %3193 = vmatprep.mubr.msk.bf16.mxu0 %vm3581_vm1, %v3580_v1 }
 0x93a   :  { %3179 = vmatprep.subr.bf16.mxu0 %v3580_v1 }
 0x93d   :  { %3180 = vmatpush3.bf16.msra.mxu0 %v3427_v51  ;;  %v1831_v51 = vpop.permute.xlu1 %1830 }
 0x93e   :  { %3181 = vmatprep.subr.bf16.mxu0 %v3580_v1  ;;  %vm1832_vm14 = vcmp.eq.s32.totalorder %v3912_v21, %v1831_v51  ;;  %v2885_v51 = vld [vmem:[%s4376_s3] ss:$0 sm:$0xff] }
 0x941   :  { %3182 = vmatpush3.bf16.msra.mxu0 %v3428_v52 }
 0x942   :  { %3183 = vmatprep.subr.bf16.mxu0 %v3580_v1 }
 0x945   :  { %3184 = vmatpush3.bf16.msra.mxu0 %v3429_v53  ;;  %v2876_v53 = vsel %vm1832_vm14, 1.0, %v3580_v1 }
 0x946   :  { %3185 = vmatprep.subr.bf16.mxu0 %v3580_v1 }
 0x949   :  { %3186 = vmatpush3.bf16.msra.mxu0 %v3430_v55  ;;  %v3438_v55 = vld [vmem:[%s4367_s23] sm:$0xff]  }
 0x94a   :  { %3187 = vmatprep.subr.bf16.mxu0 %v3580_v1 }
 0x94d   :  { %3188 = vmatpush3.bf16.msra.mxu0 %v3431_v56  ;;  %v1835_v56 = vpack.c.bf16 %v2876_v53, %v2876_v53 }
 0x94e   :  { %3189 = vmatprep.subr.bf16.mxu0 %v3580_v1 }
 0x951   :  { %3190 = vmatpush3.bf16.msra.mxu0 %v3432_v57  ;;  %v2853_v57 = vld [vmem:[%s4368_s26] ss:$0 sm:$0xff] }
 0x952   :  { %3191 = vmatprep.subr.bf16.mxu0 %v3580_v1 }
 0x955   :  { %3192 = vmatpush3.bf16.msra.mxu0 %v3433_v58  ;;  %v3439_v58 = vld [vmem:[%s4367_s23 + $0x8] sm:$0xff]  }
 0x956   :  { %3223 = vmatprep.subr.bf16.mxu0 %v3580_v1 }
 0x996   :  { %v1326_v63 = vpop.f32.mrb[16].mxu0 }
 0x997   :  { %v1327_v3 = vadd.f32 %v2842_v62, %v1326_v63  ;;  %v3155_v5 = vpop.f32.mrb[17].mxu0 }
 0x998   :  { %v1329_v7 = vpop.f32.mrb[18].mxu0  ;;  %v2872_v5 = vld [vmem:[%s4371_s17] ss:$0 sm:$0xff] }
 0x999   :  { %1341 = vst [vmem:[#allocation2] sm:$0xff] %v1327_v3  ;;  %v1330_v8 = vadd.f32 %v2842_v62, %v1329_v7  ;;  %v3156_v9 = vpop.f32.mrb[19].mxu0  ;;  %v2110_v62 = vsel %vm240_vm0, %v3997_v2, 0 }
 0x99b   :  { %1342 = vst [vmem:[#allocation2 + $0x8] sm:$0xff] %v1330_v8  ;;  %v4116_v11 = vpack.c.bf16 %v1330_v8, %v1327_v3  ;;  %v2091_v3 = vld [vmem:[%s4370_s9] sm:$0xff] }
 0x99c   :  { %3474 = vrcp.f32 %v2091_v3 }
 0x99d   :  { %3194 = vmatmul.mubr.bf16.vlgmr.msra.gmra.mrb[24].mxu0 %v4116_v11 }
 0x99e   :  { %3227 = vmatprep.mubr.msk.bf16.mxu0 %vm3581_vm1, %v3580_v1  ;;  %3224 = vmatpush3.bf16.msra.mxu0 %v3440_v43 }
 0x99f   :  { %3225 = vmatprep.subr.bf16.mxu0 %v3580_v1 }
 0xa0b   :  { %v1461_v13 = vpop.f32.mrb[20].mxu0 }
 0xa0c   :  { %v1462_v14 = vadd.f32 %v2851_v12, %v1461_v13  ;;  %v3167_v15 = vpop.f32.mrb[21].mxu0 }
 0xa0d   :  { %v1464_v16 = vpop.f32.mrb[22].mxu0 }
 0xa0e   :  { %v1467_v17 = vmax.f32 %v1462_v14, 0.0  ;;  %v3168_v18 = vpop.f32.mrb[23].mxu0  ;;  %v3475_v16 = vpop.eup %3474 }
 0xa10   :  { %v1468_v19 = vpack.c.bf16 %v1467_v17, %v1467_v17 }
 0xa12   :  { %3174 = vmatmul.mubr.msk.bf16.vlgmr.msra.gmra.mrb[40].mxu1 %vm350_vm3, %v1468_v19 }
 0xa13   :  { %3199 = vmatprep.mubr.msk.bf16.mxu1 %vm3581_vm1, %v3580_v1 }
 0xa70   :  { %v1633_v4 = vpop.f32.mrb[24].mxu0 }
 0xa71   :  { %v3195_v10 = vpop.f32.mrb[25].mxu0 }
 0xa72   :  { %v1636_v24 = vpop.f32.mrb[26].mxu0 }
 0xa73   :  { %v1655_v20 = vpack.c.bf16 %v1636_v24, %v1633_v4  ;;  %v3196_v26 = vpop.f32.mrb[27].mxu0 }
 0xa74   :  { %v3442_v26 = vld [vmem:[%s4372_s21] sm:$0xff]  }
 0xa75   :  { %3198 = vmatpush3.bf16.msra.mxu1 %v1655_v20 }
 0xa76   :  { %3203 = vmatprep.subr.bf16.mxu1 %v3580_v1 }
 0xa78   :  { %3200 = vmatmul.mubr.msk.bf16.vlgmr.msra.gmra.mrb[44].mxu1 %vm421_vm6, %v1654_v28  ;;  %v1898_v28 = vpop.permute.xlu0 %1897 }
 0xa79   :  { %3205 = vmatprep.mubr.msk.bf16.mxu1 %vm3581_vm1, %v3580_v1 }
 0xae5   :  { %v1529_v29 = vpop.f32.mrb[40].mxu1 }
 0xae6   :  { %v3175_v30 = vpop.f32.mrb[41].mxu1  ;;  %v1530_v21 = vadd.f32 %v2853_v57, %v1529_v29 }
 0xae7   :  { %v1532_v31 = vpop.f32.mrb[42].mxu1 }
 0xae8   :  { %v3176_v36 = vpop.f32.mrb[43].mxu1  ;;  %v1943_v59 = vpack.c.bf16 %v1530_v21, %v1530_v21 }
 0xb4b   :  { %v1693_v33 = vpop.f32.mrb[44].mxu1 }
 0xb4c   :  { %v3201_v40 = vpop.f32.mrb[45].mxu1 }
 0xb4d   :  { %v1696_v35 = vpop.f32.mrb[46].mxu1 }
 0xb4e   :  { %v1709_v37 = vpack.c.bf16 %v1696_v35, %v1693_v33  ;;  %v3202_v38 = vpop.f32.mrb[47].mxu1 }
 0xb50   :  { %3204 = vmatpush3.bf16.msra.mxu1 %v1709_v37 }
 0xb51   :  { %3209 = vmatprep.subr.bf16.mxu1 %v3580_v1 }
 0xb53   :  { %3206 = vmatmul.mubr.msk.bf16.vlgmr.msra.gmra.mrb[48].mxu1 %vm421_vm6, %v1708_v39 }
 0xb54   :  { %3210 = vmatpush3.bf16.msra.mxu1 %v3436_v42  ;;  %3213 = vmatprep.mubr.msk.bf16.mxu1 %vm3581_vm1, %v3580_v1 }
 0xb55   :  { %3211 = vmatprep.subr.bf16.mxu1 %v3580_v1 }
 0xb58   :  { %3212 = vmatpush3.bf16.msra.mxu1 %v3437_v61 }
 0xb59   :  { %3217 = vmatprep.subr.bf16.mxu1 %v3580_v1 }
 0xc26   :  { %v1754_v45 = vpop.f32.mrb[48].mxu1 }
 0xc27   :  { %v1755_v46 = vadd.f32 %v2870_v44, %v1754_v45  ;;  %v3207_v47 = vpop.f32.mrb[49].mxu1  ;;  %v3444_v44 = vld [vmem:[%s4375_s29] sm:$0xff]   ;;  %v3445_v45 = vld [vmem:[%s4375_s29 + $0x8] sm:$0xff]  }
 0xc28   :  { %v1757_v48 = vpop.f32.mrb[50].mxu1  ;;  %v3448_v47 = vld [vmem:[%s4375_s29 + $0x20] sm:$0xff]  }
 0xc29   :  { %v1760_v49 = vmax.f32 %v1755_v46, 0.0  ;;  %v3208_v50 = vpop.f32.mrb[51].mxu1  ;;  %v3447_v46 = vld [vmem:[%s4375_s29 + $0x18] sm:$0xff]   ;;  %v3449_v48 = vld [vmem:[%s4375_s29 + $0x28] sm:$0xff]  }
 0xc2a   :  { %v3451_v50 = vld [vmem:[%s4375_s29 + $0x38] sm:$0xff]  }
 0xc2b   :  { %v1761_v52 = vpack.c.bf16 %v1760_v49, %v1760_v49  ;;  %v3450_v49 = vld [vmem:[%s4375_s29 + $0x30] sm:$0xff]  }
 0xc2d   :  { %3214 = vmatmul.mubr.msk.bf16.vlgmr.msra.gmra.mrb[52].mxu1 %vm350_vm3, %v1761_v52  ;;  %v2896_v52 = vld [vmem:[%s4377_s19] ss:$0 sm:$0xff] }
 0xc2e   :  { %3218 = vmatpush3.bf16.msra.mxu1 %v3945_v54  ;;  %3219 = vmatprep.mubr.msk.bf16.mxu1 %vm3581_vm1, %v3580_v1  ;;  %v2890_v54 = vld [vmem:[%s4369_s5] ss:$0 sm:$0xff]  ;;  %vm2221_vm5 = vcmp.eq.s32.totalorder %v4014_v22, %v2896_v52 }
 0xc2f   :  { %3231 = vmatprep.subr.bf16.mxu1 %v3580_v1  ;;  %vm2102_vm15 = vcmp.eq.s32.totalorder %v4014_v22, %v2890_v54 }
 0xc30   :  { %v2891_v60 = vsel %vm2102_vm15, 1.0, %v3580_v1 }
 0xc31   :  { %v2105_v63 = vpack.c.bf16 %v2891_v60, %v2891_v60 }
 0xc35   :  { %3220 = vmatmul.mubr.msk.bf16.vlgmr.msra.gmra.mrb[56].mxu1 %vm236_vm2, %v1835_v56 }
 0xc36   :  { %3232 = vmatpush3.bf16.msra.mxu1 %v3438_v55  ;;  %3235 = vmatprep.mubr.msk.bf16.mxu1 %vm3581_vm1, %v3580_v1 }
 0xc37   :  { %3233 = vmatprep.subr.bf16.mxu1 %v3580_v1 }
 0xc3a   :  { %3234 = vmatpush3.bf16.msra.mxu1 %v3439_v58 }
 0xc3b   :  { %3247 = vmatprep.subr.bf16.mxu1 %v3580_v1 }
 0xc3d   :  { %3236 = vmatmul.mubr.msk.bf16.vlgmr.msra.gmra.mrb[60].mxu1 %vm350_vm3, %v1943_v59  ;;  %v2897_v59 = vsel %vm2221_vm5, 1.0, %v3580_v1 }
 0xc3e   :  { %3248 = vmatpush3.bf16.msra.mxu1 %v3995_v0  ;;  %3251 = vmatprep.mubr.msk.bf16.mxu1 %vm3581_vm1, %v3580_v1  ;;  %v3441_v0 = vld [vmem:[%s4365_s18 + $0x8] sm:$0xff]  }
 0xc3f   :  { %3249 = vmatprep.subr.bf16.mxu1 %v3580_v1  ;;  %3226 = vmatpush3.bf16.msra.mxu0 %v3441_v0  ;;  %v2213_v0 = vpop.permute.xlu0 %2212 }
 0xc40   :  { %3239 = vmatprep.subr.bf16.mxu0 %v3580_v1 }
 0xc42   :  { %3250 = vmatpush3.bf16.msra.mxu1 %v2110_v62 }
 0xc43   :  { %3261 = vmatprep.subr.bf16.mxu1 %v3580_v1 }
 0xc45   :  { %3252 = vmatmul.mubr.msk.bf16.vlgmr.msra.gmra.mrb[64].mxu1 %vm991_vm4, %v2105_v63  ;;  %v2224_v63 = vpack.c.bf16 %v2897_v59, %v2897_v59 }
 0xc46   :  { %3263 = vmatprep.mubr.msk.bf16.mxu1 %vm3581_vm1, %v3580_v1 }
 0xd00   :  { %v1822_v7 = vpop.f32.mrb[52].mxu1 }
 0xd01   :  { %v1823_v8 = vadd.f32 %v2872_v5, %v1822_v7  ;;  %v3215_v9 = vpop.f32.mrb[53].mxu1  ;;  %v3452_v5 = vld [vmem:[%s4378_s24] sm:$0xff]  }
 0xd02   :  { %v1825_v2 = vpop.f32.mrb[54].mxu1 }
 0xd03   :  { %v1879_v12 = vpack.c.bf16 %v1823_v8, %v1823_v8  ;;  %v3216_v13 = vpop.f32.mrb[55].mxu1  ;;  %v3460_v2 = vld [vmem:[%s4379_s30] sm:$0xff]  }
 0xd05   :  { %3228 = vmatmul.mubr.msk.bf16.vlgmr.msra.gmra.mrb[28].mxu0 %vm350_vm3, %v1879_v12 }
 0xd06   :  { %3243 = vmatprep.mubr.msk.bf16.mxu0 %vm3581_vm1, %v3580_v1  ;;  %3240 = vmatpush3.bf16.msra.mxu0 %v3442_v26  ;;  %v3466_v26 = vld [vmem:[%s4379_s30 + $0x30] sm:$0xff]  }
 0xd07   :  { %3241 = vmatprep.subr.bf16.mxu0 %v3580_v1 }
 0xd08   :  { %v1873_v14 = vpop.f32.mrb[56].mxu1 }
 0xd09   :  { %2005 = vrot.lane.b32.xlu1 %v1873_v14, %s3584_s13  ;;  %v3221_v15 = vpop.f32.mrb[57].mxu1  ;;  %s4374_s13 = sld [smem:[#allocation16_spill]]  ;;  %v3453_v14 = vld [vmem:[%s4378_s24 + $0x8] sm:$0xff]  }
 0xd0a   :  { %v1876_v17 = vpop.f32.mrb[58].mxu1  ;;  %3242 = vmatpush3.bf16.msra.mxu0 %v3443_v27  ;;  %v3461_v15 = vld [vmem:[%s4379_s30 + $0x8] sm:$0xff]   ;;  %v3459_v27 = vld [vmem:[%s4378_s24 + $0x38] sm:$0xff]  }
 0xd0b   :  { %v3222_v18 = vpop.f32.mrb[59].mxu1  ;;  %3255 = vmatprep.subr.bf16.mxu0 %v3580_v1  ;;  %v3462_v17 = vld [vmem:[%s4379_s30 + $0x10] sm:$0xff]  }
 0xd0c   :  { %v3455_v18 = vld [vmem:[%s4378_s24 + $0x18] sm:$0xff]  }
 0xd0d   :  { %2154 = vperm.xlu1 %3404, %v3475_v16   ;;  %v3454_v16 = vld [vmem:[%s4378_s24 + $0x10] sm:$0xff]  }
 0xd0f   :  { %v2893_v38 = vld [vmem:[%s4374_s13] ss:$0 sm:$0xff] }
 0xd10   :  { %v1997_v19 = vpop.f32.mrb[60].mxu1  ;;  %vm2163_vm4 = vcmp.eq.s32.totalorder %v4014_v22, %v2893_v38 }
 0xd11   :  { %v3237_v6 = vpop.f32.mrb[61].mxu1  ;;  %v2894_v61 = vsel %vm2163_vm4, 1.0, %v3580_v1 }
 0xd12   :  { %v2000_v23 = vpop.f32.mrb[62].mxu1  ;;  %v2166_v43 = vpack.c.bf16 %v2894_v61, %v2894_v61  ;;  %v3456_v6 = vld [vmem:[%s4378_s24 + $0x20] sm:$0xff]  }
 0xd13   :  { %v3238_v4 = vpop.f32.mrb[63].mxu1  ;;  %v3464_v23 = vld [vmem:[%s4379_s30 + $0x20] sm:$0xff]  }
 0xd14   :  { %v3457_v4 = vld [vmem:[%s4378_s24 + $0x28] sm:$0xff]  }
 0xd18   :  { %v4184_v10 = vpop.f32.mrb[64].mxu1 }
 0xd19   :  { %v3253_v24 = vpop.f32.mrb[65].mxu1 }
 0xd1a   :  { %v2149_v25 = vpop.f32.mrb[66].mxu1  ;;  %v3465_v24 = vld [vmem:[%s4379_s30 + $0x28] sm:$0xff]  }
 0xd1b   :  { %v3254_v20 = vpop.f32.mrb[67].mxu1  ;;  %v3458_v25 = vld [vmem:[%s4378_s24 + $0x30] sm:$0xff]  }
 0xd7b   :  { %v2006_v40 = vpop.permute.xlu1 %2005 }
 0xd8c   :  { %v2155_v20 = vpop.permute.xlu1 %2154 }
 0xdd8   :  { %v1937_v29 = vpop.f32.mrb[28].mxu0 }
 0xdd9   :  { %v1938_v30 = vadd.f32 %v1937_v29, %v1898_v28  ;;  %v3229_v31 = vpop.f32.mrb[29].mxu0  ;;  %v2157_v28 = vmul.f32 %v2155_v20, %v4184_v10 }
 0xdda   :  { %v1940_v36 = vpop.f32.mrb[30].mxu0  ;;  %v2274_v31 = vpop.permute.xlu0 %2273 }
 0xddb   :  { %v2003_v32 = vadd.f32 %v1997_v19, %v1938_v30  ;;  %v3230_v33 = vpop.f32.mrb[31].mxu0  ;;  %v3463_v19 = vld [vmem:[%s4379_s30 + $0x18] sm:$0xff]   ;;  %v2387_v29 = vpack.c.bf16 %v2157_v28, %v2157_v28 }
 0xddc   :  { %v3467_v30 = vld [vmem:[%s4379_s30 + $0x38] sm:$0xff]  }
 0xddd   :  { %v2008_v35 = vadd.f32 %v2006_v40, %v2003_v32 }
 0xddf   :  { %v2016_v37 = vadd.f32 %v2884_v34, %v2008_v35 }
 0xde1   :  { %v2017_v39 = vmax.f32 %v2016_v37, 0.0 }
 0xde3   :  { %v2018_v42 = vpack.c.bf16 %v2017_v39, %v2017_v39 }
 0xde5   :  { %3244 = vmatmul.mubr.msk.bf16.vlgmr.msra.gmra.mrb[32].mxu0 %vm350_vm3, %v2018_v42 }
 0xde6   :  { %3256 = vmatpush3.bf16.msra.mxu0 %v4116_v11  ;;  %3257 = vmatprep.mubr.msk.bf16.mxu0 %vm3581_vm1, %v3580_v1  ;;  %v3446_v11 = vld [vmem:[%s4375_s29 + $0x10] sm:$0xff]  }
 0xde7   :  { %3267 = vmatprep.subr.bf16.mxu0 %v3580_v1 }
 0xded   :  { %3258 = vmatmul.mubr.msk.bf16.vlgmr.msra.gmra.mrb[36].mxu0 %vm421_vm6, %v2166_v43  ;;  %vm2085_vm6 = vcmp.lt.s32.totalorder %v4014_v22, 6 }
 0xdee   :  { %3268 = vmatpush3.bf16.msra.mxu0 %v3444_v44  ;;  %3283 = vmatprep.mubr.msk.bf16.mxu0 %vm3581_vm1, %v3580_v1  ;;  %v2889_v55 = vsel %vm2085_vm6, 1.0, %v3580_v1 }
 0xdef   :  { %3269 = vmatprep.subr.bf16.mxu0 %v3580_v1 }
 0xdf2   :  { %3270 = vmatpush3.bf16.msra.mxu0 %v3445_v45  ;;  %v2923_v45 = vld [vmem:[%s4380_s12] ss:$0 sm:$0xff] }
 0xdf3   :  { %3271 = vmatprep.subr.bf16.mxu0 %v3580_v1 }
 0xdf6   :  { %3272 = vmatpush3.bf16.msra.mxu0 %v3446_v11  ;;  %v3468_v11 = vld [vmem:[%s4381_s20] sm:$0xff]  }
 0xdf7   :  { %3273 = vmatprep.subr.bf16.mxu0 %v3580_v1 }
 0xdfa   :  { %3274 = vmatpush3.bf16.msra.mxu0 %v3447_v46  ;;  %v3469_v46 = vld [vmem:[%s4381_s20 + $0x8] sm:$0xff]  }
 0xdfb   :  { %3275 = vmatprep.subr.bf16.mxu0 %v3580_v1 }
 0xdfe   :  { %3276 = vmatpush3.bf16.msra.mxu0 %v3448_v47 }
 0xdff   :  { %3277 = vmatprep.subr.bf16.mxu0 %v3580_v1 }
 0xe02   :  { %3278 = vmatpush3.bf16.msra.mxu0 %v3449_v48 }
 0xe03   :  { %3279 = vmatprep.subr.bf16.mxu0 %v3580_v1 }
 0xe06   :  { %3280 = vmatpush3.bf16.msra.mxu0 %v3450_v49 }
 0xe07   :  { %3281 = vmatprep.subr.bf16.mxu0 %v3580_v1 }
 0xe0a   :  { %3282 = vmatpush3.bf16.msra.mxu0 %v3451_v50 }
 0xe0b   :  { %3307 = vmatprep.subr.bf16.mxu0 %v3580_v1 }
 0xeb8   :  { %v2079_v53 = vpop.f32.mrb[32].mxu0 }
 0xeb9   :  { %v2080_v56 = vadd.f32 %v2885_v51, %v2079_v53  ;;  %v3245_v57 = vpop.f32.mrb[33].mxu0 }
 0xeba   :  { %v2082_v58 = vpop.f32.mrb[34].mxu0 }
 0xebb   :  { %v2088_v21 = vmul.f32 %v2889_v55, %v2080_v56  ;;  %v3246_v54 = vpop.f32.mrb[35].mxu0 }
 0xebd   :  { %v2090_v60 = vpack.c.bf16 %v2088_v21, %v2088_v21  ;;  %2089 = vst [vmem:[#allocation4] sm:$0xff] %v2088_v21 }
 0xebf   :  { %v2229_v62 = vsel %vm240_vm0, %v2090_v60, 0 }
 0xec0   :  { %v2204_v3 = vpop.f32.mrb[36].mxu0  ;;  %3262 = vmatpush3.bf16.msra.mxu1 %v2229_v62 }
 0xec1   :  { %v2215_v7 = vmul.f32 %v2213_v0, %v2204_v3  ;;  %3287 = vmatprep.subr.bf16.mxu1 %v3580_v1  ;;  %v3259_v8 = vpop.f32.mrb[37].mxu0 }
 0xec2   :  { %v2207_v9 = vpop.f32.mrb[38].mxu0 }
 0xec3   :  { %v2277_v12 = vpack.c.bf16 %v2215_v7, %v2215_v7  ;;  %3264 = vmatmul.mubr.msk.bf16.vlgmr.msra.gmra.mrb[68].mxu1 %vm236_vm2, %v2224_v63  ;;  %v3260_v13 = vpop.f32.mrb[39].mxu0 }
 0xec4   :  { %3288 = vmatpush3.bf16.msra.mxu1 %v3452_v5  ;;  %3303 = vmatprep.mubr.msk.bf16.mxu1 %vm3581_vm1, %v3580_v1 }
 0xec5   :  { %3284 = vmatmul.mubr.bf16.vlgmr.msra.gmra.mrb[40].mxu0 %v2277_v12  ;;  %3289 = vmatprep.subr.bf16.mxu1 %v3580_v1 }
 0xec6   :  { %3308 = vmatpush3.bf16.msra.mxu0 %v3460_v2  ;;  %3323 = vmatprep.mubr.msk.bf16.mxu0 %vm3581_vm1, %v3580_v1 }
 0xec7   :  { %3309 = vmatprep.subr.bf16.mxu0 %v3580_v1 }
 0xec8   :  { %3290 = vmatpush3.bf16.msra.mxu1 %v3453_v14 }
 0xec9   :  { %3291 = vmatprep.subr.bf16.mxu1 %v3580_v1 }
 0xeca   :  { %3310 = vmatpush3.bf16.msra.mxu0 %v3461_v15 }
 0xecb   :  { %3311 = vmatprep.subr.bf16.mxu0 %v3580_v1 }
 0xecc   :  { %3292 = vmatpush3.bf16.msra.mxu1 %v3454_v16 }
 0xecd   :  { %3293 = vmatprep.subr.bf16.mxu1 %v3580_v1 }
 0xece   :  { %3312 = vmatpush3.bf16.msra.mxu0 %v3462_v17 }
 0xecf   :  { %3313 = vmatprep.subr.bf16.mxu0 %v3580_v1 }
 0xed0   :  { %3294 = vmatpush3.bf16.msra.mxu1 %v3455_v18 }
 0xed1   :  { %3295 = vmatprep.subr.bf16.mxu1 %v3580_v1 }
 0xed2   :  { %3314 = vmatpush3.bf16.msra.mxu0 %v3463_v19 }
 0xed3   :  { %3315 = vmatprep.subr.bf16.mxu0 %v3580_v1 }
 0xed4   :  { %3296 = vmatpush3.bf16.msra.mxu1 %v3456_v6 }
 0xed5   :  { %3297 = vmatprep.subr.bf16.mxu1 %v3580_v1 }
 0xed6   :  { %3316 = vmatpush3.bf16.msra.mxu0 %v3464_v23 }
 0xed7   :  { %3317 = vmatprep.subr.bf16.mxu0 %v3580_v1 }
 0xed8   :  { %3298 = vmatpush3.bf16.msra.mxu1 %v3457_v4 }
 0xed9   :  { %3299 = vmatprep.subr.bf16.mxu1 %v3580_v1 }
 0xeda   :  { %3318 = vmatpush3.bf16.msra.mxu0 %v3465_v24 }
 0xedb   :  { %3319 = vmatprep.subr.bf16.mxu0 %v3580_v1 }
 0xedc   :  { %3300 = vmatpush3.bf16.msra.mxu1 %v3458_v25 }
 0xedd   :  { %3301 = vmatprep.subr.bf16.mxu1 %v3580_v1 }
 0xede   :  { %3320 = vmatpush3.bf16.msra.mxu0 %v3466_v26 }
 0xedf   :  { %3321 = vmatprep.subr.bf16.mxu0 %v3580_v1 }
 0xee0   :  { %3302 = vmatpush3.bf16.msra.mxu1 %v3459_v27 }
 0xee1   :  { %3327 = vmatprep.subr.bf16.mxu1 %v3580_v1 }
 0xee2   :  { %3322 = vmatpush3.bf16.msra.mxu0 %v3467_v30 }
 0xee3   :  { %3304 = vmatmul.mubr.bf16.vlgmr.msra.gmra.mrb[72].mxu1 %v2387_v29 }
 0xee4   :  { %3331 = vmatprep.mubr.msk.bf16.mxu1 %vm3581_vm1, %v3580_v1  ;;  %3328 = vmatpush3.bf16.msra.mxu1 %v3468_v11 }
 0xee5   :  { %3329 = vmatprep.subr.bf16.mxu1 %v3580_v1 }
 0xee8   :  { %3330 = vmatpush3.bf16.msra.mxu1 %v3469_v46 }
 0xf96   :  { %v2265_v36 = vpop.f32.mrb[68].mxu1 }
 0xf97   :  { %v2276_v32 = vmul.f32 %v2274_v31, %v2265_v36  ;;  %v3265_v10 = vpop.f32.mrb[69].mxu1 }
 0xf98   :  { %v2376_v33 = vpop.f32.mrb[40].mxu0  ;;  %v2268_v40 = vpop.f32.mrb[70].mxu1 }
 0xf99   :  { %v2497_v34 = vpack.c.bf16 %v2276_v32, %v2276_v32  ;;  %2383 = vrot.lane.b32.xlu1 %v2376_v33, %s3583_s0  ;;  %v3285_v35 = vpop.f32.mrb[41].mxu0  ;;  %v3266_v37 = vpop.f32.mrb[71].mxu1 }
 0xf9a   :  { %v2379_v38 = vpop.f32.mrb[42].mxu0 }
 0xf9b   :  { %v3286_v39 = vpop.f32.mrb[43].mxu0  ;;  %3324 = vmatmul.mubr.bf16.vlgmr.msra.gmra.mrb[44].mxu0 %v2497_v34 }
 0xfb6   :  { %v2486_v42 = vpop.f32.mrb[72].mxu1 }
 0xfb7   :  { %2493 = vrot.lane.b32.xlu0 %v2486_v42, %s3583_s0  ;;  %v3305_v61 = vpop.f32.mrb[73].mxu1 }
 0xfb8   :  { %v2489_v43 = vpop.f32.mrb[74].mxu1 }
 0xfb9   :  { %v3306_v44 = vpop.f32.mrb[75].mxu1 }
 0xfbb   :  { %2613 = vrot.lane.b32.xlu0 %v2923_v45, %s3583_s0 }
0x100b   :  { %v2384_v51 = vpop.permute.xlu1 %2383 }
0x100c   :  { %v2386_v53 = vadd.f32 %v2384_v51, %v3934_v41 }
0x1029   :  { %v2494_v52 = vpop.permute.xlu0 %2493 }
0x102a   :  { %v2496_v55 = vadd.f32 %v2494_v52, %v2386_v53 }
0x102d   :  { %v2614_v57 = vpop.permute.xlu0 %2613 }
0x106e   :  { %v2596_v47 = vpop.f32.mrb[44].mxu0 }
0x106f   :  { %2603 = vrot.lane.b32.xlu1 %v2596_v47, %s3583_s0  ;;  %v3325_v48 = vpop.f32.mrb[45].mxu0  ;;  %s3586_s0 = smov [#allocation2]  }
0x1070   :  { %v2599_v49 = vpop.f32.mrb[46].mxu0  ;;  %s2700_s27 = sshll.u32 %s3586_s0, 4  ;;  %s2701_s27 = int_to_ptr.vmem [resolvable:$true] %s2700_s27 }
0x1071   :  { %v3326_v50 = vpop.f32.mrb[47].mxu0  ;;  %s3476_s2 = scalar_lea.vmem %s2701_s27, 256  ;;  %p3481_p1 = scmp.lt.s32.totalorder %s2701_s27, %s2701_s27 }
0x1072   :  { %p3477_p0 = scmp.ne.s32.totalorder %s2701_s27, %s3476_s2  ;;  %p3482_p2 = scmp.lt.s32.totalorder %s3476_s2, %s3476_s2 }
0x1074   :  { %p3483_p3 = por %p3482_p2, %p3481_p1 }
0x1076   :  { %p3484_p4 = pnand %p3483_p3, %p3477_p0 }
0x10e1   :  { %v2604_v56 = vpop.permute.xlu1 %2603 }
0x10e2   :  { %v2606_v58 = vadd.f32 %v2604_v56, %v2496_v55 }
0x10e4   :  { %v2616_v21 = vadd.f32 %v2614_v57, %v2606_v58 }
0x10e6   :  { %v2617_v54 = vmax.f32 %v2616_v21, 0.0 }
0x10e8   :  { %v2618_v59 = vpack.c.bf16 %v2617_v54, %v2617_v54 }
0x10ea   :  { %2631 = vrot.lane.b32.xlu1 %v2618_v59, %s3585_s28 }
0x115c   :  { %v2632_v60 = vpop.permute.xlu1 %2631 }
0x115d   :  { %3332 = vmatmul.mubr.msk.bf16.vlgmr.msra.gmra.mrb[76].mxu1 %vm350_vm3, %v2632_v60 }
0x115e   :  { %3487 = shalt.err (!%p3484_p4)
}
0x115f   :  { %s3488_s28 = scalar_lea.hbm %s3868_s8, 256 }
0x1160   :  { %p3489_p5 = scmp.ne.s32.totalorder %s3868_s8, %s3488_s28  ;;  %p3492_p6 = scmp.lt.u32.totalorder %s3488_s28, %s3868_s8 }
0x1162   :  { %p3494_p7 = pnand %p3492_p6, %p3489_p5 }
0x1164   :  { %3497 = shalt.err (!%p3494_p7)
}
0x1165   :  { %s3588_s7 = smov 128   ;;  %s3589_s10 = smov 8  }
0x1166   :  { %2706 = dma.vmem_to_hbm [thread:$0]  %s2701_s27, 256, %s3868_s8, [#allocation3], %s3588_s7, %s3588_s7, %s3589_s10  }
0x1167   :  { %s3498_s11 = scalar_lea.vmem %s2714_s1, 128  ;;  %p3503_p9 = scmp.lt.s32.totalorder %s2714_s1, %s2714_s1 }
0x1168   :  { %p3499_p8 = scmp.ne.s32.totalorder %s2714_s1, %s3498_s11  ;;  %p3504_p10 = scmp.lt.s32.totalorder %s3498_s11, %s3498_s11 }
0x116a   :  { %p3505_p11 = por %p3504_p10, %p3503_p9 }
0x116c   :  { %p3506_p12 = pnand %p3505_p11, %p3499_p8 }
0x116e   :  { %3509 = shalt.err (!%p3506_p12)
}
0x116f   :  { %s3510_s15 = scalar_lea.hbm %s3873_s6, 128 }
0x1170   :  { %p3511_p13 = scmp.ne.s32.totalorder %s3873_s6, %s3510_s15  ;;  %p3514_p0 = scmp.lt.u32.totalorder %s3510_s15, %s3873_s6 }
0x1172   :  { %p3516_p1 = pnand %p3514_p0, %p3511_p13 }
0x1174   :  { %3519 = shalt.err (!%p3516_p1)
}
0x1175   :  { %s4382_s16 = sld [smem:[#allocation46_spill]]  ;;  %vm2688_vm0 = vcmp.lt.s32.totalorder %v4014_v22, 2 }
0x1176   :  { %2716 = dma.vmem_to_hbm [thread:$0]  %s2714_s1, 128, %s3873_s6, [#allocation5]   ;;  %v2928_v63 = vsel %vm2688_vm0, 1.0, %v3580_v1 }
0x117b   :  { %v2924_v41 = vld [vmem:[%s4382_s16] ss:$0 sm:$0xff] }
0x1230   :  { %v2682_v62 = vpop.f32.mrb[76].mxu1 }
0x1231   :  { %v2683_v0 = vadd.f32 %v2924_v41, %v2682_v62  ;;  %v3333_v3 = vpop.f32.mrb[77].mxu1 }
0x1232   :  { %v2685_v5 = vpop.f32.mrb[78].mxu1 }
0x1233   :  { %v2691_v7 = vmul.f32 %v2928_v63, %v2683_v0  ;;  %v3334_v8 = vpop.f32.mrb[79].mxu1 }
0x1235   :  { %2692 = vst [vmem:[%s3878_s14] sm:$0xff] %v2691_v7 }
0x1236   :  { %3520 = dma.done.wait [#allocation3], 256  }
0x1237   :  { %3521 = vsyncadd [#allocation3], 4294967040 }
0x1238   :  { %3522 = dma.done.wait [#allocation5], 128  }
0x1239   :  { %3523 = vsyncadd [#allocation5], 4294967168 }
0x123a   :  { %2729 = vsyncpa [#allocation3], 1 }
0x123b   :  { %2730 = vsyncpa [#allocation5], 1 }

</bundles_post_ra>
